<compile_context>
chip_gen: v6e
topology: v6e:2x2x1
jax: 0.10.0
libtpu: 0.0.40
codegen_flags: <defaults>
</compile_context>

<pallas_src>
import jax
import jax.numpy as jnp
from jax.experimental import pallas as pl
from jax.experimental.pallas import tpu as pltpu

EPS = 1e-5

# ---------------------------------------------------------------------------
# Packed small-parameter layout: each segment starts at a 128-lane-aligned
# offset so in-kernel static slices stay inside clean lane tiles.
# ---------------------------------------------------------------------------
_SEGS = (
    ("g1", 512), ("be1", 512),            # DownBlock(in->512) BN
    ("ga", 256), ("bea", 256),            # Residual(512,256) BN a
    ("gb", 256), ("beb", 256),            # Residual(512,256) BN b
    ("bl1", 256),                         # Residual(512,256) shortcut bias
    ("g2", 64), ("be2", 64),              # DownBlock(256->64) BN
    ("gc", 32), ("bec", 32),              # Residual(64,32) BN a
    ("gd", 32), ("bed", 32),              # Residual(64,32) BN b
    ("bl2", 32),                          # Residual(64,32) shortcut bias
    ("wf", 32), ("bf", 1),                # final Linear(32->1) weight row / bias
)
OFFSETS = {}
_off = 0
for _name, _n in _SEGS:
    OFFSETS[_name] = (_off, _n)
    _off += ((_n + 127) // 128) * 128
PACKED_LEN = _off  # 3456


def _bn(h, gamma, beta):
    """BatchNorm1d (training mode): one-pass stats folded into a single FMA.

    var is clamped at 0 to guard against f32 cancellation in E[h^2]-E[h]^2.
    """
    mean = jnp.mean(h, axis=0, keepdims=True)
    mean_sq = jnp.mean(h * h, axis=0, keepdims=True)
    var = jnp.maximum(mean_sq - mean * mean, 0.0)
    scale = gamma * jax.lax.rsqrt(var + EPS)
    shift = beta - mean * scale
    return h * scale + shift


def mlp_kernel(x_ref, w1, wal1, wb, w2, wcl2, wd, p_ref, o_ref):
    # x_ref is one call's (B, f_pad) batch, already bf16 (cast in the wrapper).
    x = x_ref[...]

    def seg(name):
        off, n = OFFSETS[name]
        return p_ref[:, off:off + n]

    # DownBlock(input_size -> 512): Linear -> BN -> ReLU  (pre-BN bias dropped)
    h = jnp.maximum(
        _bn(jnp.dot(x, w1[...], preferred_element_type=jnp.float32),
            seg("g1"), seg("be1")), 0.0)

    # ResidualBlockMLP(512, 256): branch + shortcut matmuls fused into one dot.
    h_bf = h.astype(jnp.bfloat16)
    z = jnp.dot(h_bf, wal1[...], preferred_element_type=jnp.float32)   # (B, 512)
    y = jnp.maximum(_bn(z[:, :256], seg("ga"), seg("bea")), 0.0)
    y = _bn(jnp.dot(y.astype(jnp.bfloat16), wb[...],
                    preferred_element_type=jnp.float32),
            seg("gb"), seg("beb"))
    shortcut = z[:, 256:] + seg("bl1")      # input_size != output_size -> self.l
    h = jnp.maximum(shortcut + y, 0.0)

    # DownBlock(256 -> 64)
    h = jnp.maximum(
        _bn(jnp.dot(h.astype(jnp.bfloat16), w2[...],
                    preferred_element_type=jnp.float32),
            seg("g2"), seg("be2")), 0.0)

    # ResidualBlockMLP(64, 32): branch + shortcut fused into one (64,64) dot.
    h_bf = h.astype(jnp.bfloat16)
    z = jnp.dot(h_bf, wcl2[...], preferred_element_type=jnp.float32)   # (B, 64)
    y = jnp.maximum(_bn(z[:, :32], seg("gc"), seg("bec")), 0.0)
    y = _bn(jnp.dot(y.astype(jnp.bfloat16), wd[...],
                    preferred_element_type=jnp.float32),
            seg("gd"), seg("bed"))
    shortcut = z[:, 32:] + seg("bl2")
    h = jnp.maximum(shortcut + y, 0.0)

    # Final Linear(32 -> 1): degenerate N=1 matmul -> VPU multiply + lane reduce.
    o_ref[...] = jnp.sum(h * seg("wf"), axis=-1, keepdims=True) + seg("bf")


# ---------------------------------------------------------------------------
# Parameter construction / one-time preprocessing
# ---------------------------------------------------------------------------
def init_params(key, input_size=359):
    """Deterministic synthetic init (PyTorch-style uniform(-1/sqrt(fan_in), ...))."""
    params = {}

    def linear(key, fan_in, fan_out, name):
        kw, kb = jax.random.split(key)
        bound = 1.0 / jnp.sqrt(float(fan_in))
        params[name + "_w"] = jax.random.uniform(
            kw, (fan_in, fan_out), jnp.float32, -bound, bound)
        params[name + "_b"] = jax.random.uniform(
            kb, (1, fan_out), jnp.float32, -bound, bound)

    def bn(fan_out, name):
        params[name + "_g"] = jnp.ones((1, fan_out), jnp.float32)
        params[name + "_be"] = jnp.zeros((1, fan_out), jnp.float32)

    keys = jax.random.split(key, 8)
    linear(keys[0], input_size, 512, "d1");  bn(512, "d1")
    linear(keys[1], 512, 256, "r1a");        bn(256, "r1a")
    linear(keys[2], 256, 256, "r1b");        bn(256, "r1b")
    linear(keys[3], 512, 256, "r1l")
    linear(keys[4], 256, 64, "d2");          bn(64, "d2")
    linear(keys[5], 64, 32, "r2a");          bn(32, "r2a")
    linear(keys[6], 32, 32, "r2b");          bn(32, "r2b")
    linear(keys[7], 64, 32, "r2l")
    kf = jax.random.fold_in(key, 123)
    linear(kf, 32, 1, "fin")
    return params


def prepare_params(params, input_size):
    """One-time preprocessing: pad first weight to K%128==0, fuse branch+shortcut
    weight pairs, cast matmul weights to bf16, and pack every small per-feature
    vector into one lane-aligned f32 array."""
    f_pad = ((input_size + 127) // 128) * 128
    w1 = jnp.pad(params["d1_w"],
                 ((0, f_pad - input_size), (0, 0))).astype(jnp.bfloat16)

    # Fused branch‖shortcut weights (share the same input activation).
    wal1 = jnp.concatenate([params["r1a_w"], params["r1l_w"]],
                           axis=1).astype(jnp.bfloat16)          # (512, 512)
    wcl2 = jnp.concatenate([params["r2a_w"], params["r2l_w"]],
                           axis=1).astype(jnp.bfloat16)          # (64, 64)

    weights = (w1, wal1,
               params["r1b_w"].astype(jnp.bfloat16),
               params["d2_w"].astype(jnp.bfloat16),
               wcl2,
               params["r2b_w"].astype(jnp.bfloat16))

    vals = {
        "g1": params["d1_g"], "be1": params["d1_be"],
        "ga": params["r1a_g"], "bea": params["r1a_be"],
        "gb": params["r1b_g"], "beb": params["r1b_be"],
        "bl1": params["r1l_b"],
        "g2": params["d2_g"], "be2": params["d2_be"],
        "gc": params["r2a_g"], "bec": params["r2a_be"],
        "gd": params["r2b_g"], "bed": params["r2b_be"],
        "bl2": params["r2l_b"],
        "wf": params["fin_w"].reshape(1, -1),
        "bf": params["fin_b"],
    }
    packed = jnp.zeros((1, PACKED_LEN), jnp.float32)
    for name, v in vals.items():
        off, n = OFFSETS[name]
        packed = packed.at[:, off:off + n].set(
            v.reshape(1, n).astype(jnp.float32))
    # Redundant pre-BN biases (d1_b, r1a_b, r1b_b, d2_b, r2a_b, r2b_b) are NOT
    # packed — they cancel exactly inside training-mode BatchNorm.
    return weights, packed, f_pad


# ---------------------------------------------------------------------------
# Forward wrappers
# ---------------------------------------------------------------------------
def mlp_forward_many(xs, weights, packed, f_pad):
    """Fused forward of N independent calls.

    xs: (N, B, F).  Each of the N slices is an independent forward pass with its
    own BatchNorm batch statistics (identical semantics to N separate calls of
    the PyTorch module), but the ~1.1 MB of weights is DMA'd once and stays
    VMEM-resident across the grid (constant weight block indices)."""
    N, B, F = xs.shape
    xs_p = jnp.pad(xs, ((0, 0), (0, 0), (0, f_pad - F))).astype(jnp.bfloat16)

    w_specs = [pl.BlockSpec(w.shape, lambda n: (0, 0)) for w in weights]
    grid_spec = pltpu.PrefetchScalarGridSpec(
        num_scalar_prefetch=0,
        grid=(N,),
        in_specs=[pl.BlockSpec((None, B, f_pad), lambda n: (n, 0, 0))]  # per-call x
                 + w_specs                                              # resident
                 + [pl.BlockSpec((1, PACKED_LEN), lambda n: (0, 0))],   # resident
        out_specs=pl.BlockSpec((None, B, 1), lambda n: (n, 0, 0)),
    )
    fn = pl.pallas_call(
        mlp_kernel,
        out_shape=jax.ShapeDtypeStruct((N, B, 1), jnp.float32),
        grid_spec=grid_spec,
        compiler_params=pltpu.CompilerParams(
            dimension_semantics=("parallel",)),   # calls are independent (v7x 2-TC)
    )
    return fn(xs_p, *weights, packed)


def mlp_forward(x, weights, packed, f_pad):
    """Single forward call (B, F) -> (B, 1)."""
    return mlp_forward_many(x[None], weights, packed, f_pad)[0]


# ---------------------------------------------------------------------------
# Pure-JAX reference (faithful to the PyTorch module, incl. the pre-BN biases;
# uses the same bf16 matmul precision so the comparison is tight).
# ---------------------------------------------------------------------------
def mlp_reference(x, params):
    def dot(a, w):
        return jnp.dot(a.astype(jnp.bfloat16), w.astype(jnp.bfloat16),
                       preferred_element_type=jnp.float32)

    def bn(h, g, b):
        m = jnp.mean(h, axis=0, keepdims=True)
        v = jnp.mean((h - m) ** 2, axis=0, keepdims=True)
        return (h - m) * jax.lax.rsqrt(v + EPS) * g + b

    h = jax.nn.relu(bn(dot(x, params["d1_w"]) + params["d1_b"],
                       params["d1_g"], params["d1_be"]))
    y = jax.nn.relu(bn(dot(h, params["r1a_w"]) + params["r1a_b"],
                       params["r1a_g"], params["r1a_be"]))
    y = bn(dot(y, params["r1b_w"]) + params["r1b_b"],
           params["r1b_g"], params["r1b_be"])
    h = jax.nn.relu((dot(h, params["r1l_w"]) + params["r1l_b"]) + y)
    h = jax.nn.relu(bn(dot(h, params["d2_w"]) + params["d2_b"],
                       params["d2_g"], params["d2_be"]))
    y = jax.nn.relu(bn(dot(h, params["r2a_w"]) + params["r2a_b"],
                       params["r2a_g"], params["r2a_be"]))
    y = bn(dot(y, params["r2b_w"]) + params["r2b_b"],
           params["r2b_g"], params["r2b_be"])
    h = jax.nn.relu((dot(h, params["r2l_w"]) + params["r2l_b"]) + y)
    return dot(h, params["fin_w"]) + params["fin_b"]


if __name__ == "__main__":
    INPUT_SIZE = 359
    BATCH = 8
    NCALLS = 4

    key = jax.random.PRNGKey(0)
    kx, kp = jax.random.split(key)
    params = init_params(kp, input_size=INPUT_SIZE)

    # One-time preprocessing (padding / fusion / bf16 cast / packing).
    weights, packed, f_pad = prepare_params(params, INPUT_SIZE)

    # --- single-call path -------------------------------------------------
    x = jax.random.normal(kx, (BATCH, INPUT_SIZE), jnp.float32)
    out = jax.block_until_ready(mlp_forward(x, weights, packed, f_pad))
    ref = mlp_reference(x, params)
    assert out.shape == (BATCH, 1)
    assert jnp.allclose(out, ref, atol=5e-3, rtol=5e-3), (out, ref)

    # --- fused multi-call path (weights DMA'd once for NCALLS forwards) ----
    xs = jax.random.normal(jax.random.fold_in(kx, 1),
                           (NCALLS, BATCH, INPUT_SIZE), jnp.float32)
    outs = jax.block_until_ready(mlp_forward_many(xs, weights, packed, f_pad))
    refs = jnp.stack([mlp_reference(xs[i], params) for i in range(NCALLS)])
    assert outs.shape == (NCALLS, BATCH, 1)
    assert jnp.allclose(outs, refs, atol=5e-3, rtol=5e-3), (outs, refs)

    print("KERNEL_OK")
</pallas_src>

<mosaic_0001>
module attributes {stable_mosaic.version = 11 : i64} {
  func.func @mlp_kernel(%arg0: i32, %arg1: memref<1x8x384xbf16, #tpu.memory_space<vmem>>, %arg2: memref<384x512xbf16, #tpu.memory_space<vmem>>, %arg3: memref<512x512xbf16, #tpu.memory_space<vmem>>, %arg4: memref<256x256xbf16, #tpu.memory_space<vmem>>, %arg5: memref<256x64xbf16, #tpu.memory_space<vmem>>, %arg6: memref<64x64xbf16, #tpu.memory_space<vmem>>, %arg7: memref<32x32xbf16, #tpu.memory_space<vmem>>, %arg8: memref<1x3456xf32, #tpu.memory_space<vmem>>, %arg9: memref<1x8x1xf32, #tpu.memory_space<vmem>>) attributes {dimension_semantics = [#tpu.dimension_semantics<parallel>], iteration_bounds = array<i64: 1>, scalar_prefetch = 0 : i64, scratch_operands = 0 : i64, tpu.core_type = #tpu.core_type<tc>, window_params = [{transform_indices = @transform_0, window_bounds = array<i64: 1, 8, 384>}, {pipeline_mode = #tpu.pipeline_mode<synchronous>, transform_indices = @transform_1, window_bounds = array<i64: 384, 512>}, {pipeline_mode = #tpu.pipeline_mode<synchronous>, transform_indices = @transform_2, window_bounds = array<i64: 512, 512>}, {pipeline_mode = #tpu.pipeline_mode<synchronous>, transform_indices = @transform_3, window_bounds = array<i64: 256, 256>}, {pipeline_mode = #tpu.pipeline_mode<synchronous>, transform_indices = @transform_4, window_bounds = array<i64: 256, 64>}, {pipeline_mode = #tpu.pipeline_mode<synchronous>, transform_indices = @transform_5, window_bounds = array<i64: 64, 64>}, {pipeline_mode = #tpu.pipeline_mode<synchronous>, transform_indices = @transform_6, window_bounds = array<i64: 32, 32>}, {pipeline_mode = #tpu.pipeline_mode<synchronous>, transform_indices = @transform_7, window_bounds = array<i64: 1, 3456>}, {transform_indices = @transform_8, window_bounds = array<i64: 1, 8, 1>}]} {
    %c0 = arith.constant 0 : index
    %c0_0 = arith.constant 0 : index
    %c0_1 = arith.constant 0 : index
    %0 = vector.load %arg1[%c0, %c0_0, %c0_1] : memref<1x8x384xbf16, #tpu.memory_space<vmem>>, vector<1x8x384xbf16>
    %1 = vector.shape_cast %0 : vector<1x8x384xbf16> to vector<8x384xbf16>
    %c0_2 = arith.constant 0 : index
    %c0_3 = arith.constant 0 : index
    %2 = vector.load %arg2[%c0_2, %c0_3] : memref<384x512xbf16, #tpu.memory_space<vmem>>, vector<384x512xbf16>
    %cst = arith.constant dense<0.000000e+00> : vector<8x512xf32>
    %3 = tpu.matmul %1, %2, %cst {dimension_numbers = #tpu.dot_dimension_numbers<[1], [0], [0], [1], [0, 0, 1, 1], [], []>} : vector<8x384xbf16>, vector<384x512xbf16>, vector<8x512xf32> -> vector<8x512xf32>
    %c0_4 = arith.constant 0 : index
    %c0_5 = arith.constant 0 : index
    %4 = vector.load %arg8[%c0_4, %c0_5] : memref<1x3456xf32, #tpu.memory_space<vmem>>, vector<1x512xf32>
    %c0_6 = arith.constant 0 : index
    %c512 = arith.constant 512 : index
    %5 = vector.load %arg8[%c0_6, %c512] : memref<1x3456xf32, #tpu.memory_space<vmem>>, vector<1x512xf32>
    %cst_7 = arith.constant dense<0.000000e+00> : vector<512xf32>
    %6 = vector.multi_reduction <add>, %3, %cst_7 [0] : vector<8x512xf32> to vector<512xf32>
    %7 = vector.shape_cast %6 : vector<512xf32> to vector<1x512xf32>
    %cst_8 = arith.constant 8.000000e+00 : f32
    %8 = vector.broadcast %cst_8 : f32 to vector<1x512xf32>
    %9 = arith.divf %7, %8 : vector<1x512xf32>
    %10 = arith.mulf %3, %3 : vector<8x512xf32>
    %cst_9 = arith.constant dense<0.000000e+00> : vector<512xf32>
    %11 = vector.multi_reduction <add>, %10, %cst_9 [0] : vector<8x512xf32> to vector<512xf32>
    %12 = vector.shape_cast %11 : vector<512xf32> to vector<1x512xf32>
    %cst_10 = arith.constant 8.000000e+00 : f32
    %13 = vector.broadcast %cst_10 : f32 to vector<1x512xf32>
    %14 = arith.divf %12, %13 : vector<1x512xf32>
    %15 = arith.mulf %9, %9 : vector<1x512xf32>
    %16 = arith.subf %14, %15 : vector<1x512xf32>
    %cst_11 = arith.constant 0.000000e+00 : f32
    %17 = vector.broadcast %cst_11 : f32 to vector<1x512xf32>
    %18 = arith.maximumf %16, %17 : vector<1x512xf32>
    %cst_12 = arith.constant 9.99999974E-6 : f32
    %19 = vector.broadcast %cst_12 : f32 to vector<1x512xf32>
    %20 = arith.addf %18, %19 : vector<1x512xf32>
    %21 = math.rsqrt %20 : vector<1x512xf32>
    %22 = arith.mulf %4, %21 : vector<1x512xf32>
    %23 = arith.mulf %9, %22 : vector<1x512xf32>
    %24 = arith.subf %5, %23 : vector<1x512xf32>
    %25 = vector.broadcast %22 : vector<1x512xf32> to vector<8x512xf32>
    %26 = arith.mulf %3, %25 : vector<8x512xf32>
    %27 = vector.broadcast %24 : vector<1x512xf32> to vector<8x512xf32>
    %28 = arith.addf %26, %27 : vector<8x512xf32>
    %cst_13 = arith.constant 0.000000e+00 : f32
    %29 = vector.broadcast %cst_13 : f32 to vector<8x512xf32>
    %30 = arith.maximumf %28, %29 : vector<8x512xf32>
    %31 = arith.truncf %30 : vector<8x512xf32> to vector<8x512xbf16>
    %c0_14 = arith.constant 0 : index
    %c0_15 = arith.constant 0 : index
    %32 = vector.load %arg3[%c0_14, %c0_15] : memref<512x512xbf16, #tpu.memory_space<vmem>>, vector<512x512xbf16>
    %cst_16 = arith.constant dense<0.000000e+00> : vector<8x512xf32>
    %33 = tpu.matmul %31, %32, %cst_16 {dimension_numbers = #tpu.dot_dimension_numbers<[1], [0], [0], [1], [0, 0, 1, 1], [], []>} : vector<8x512xbf16>, vector<512x512xbf16>, vector<8x512xf32> -> vector<8x512xf32>
    %34 = vector.extract_strided_slice %33 {offsets = [0, 0], sizes = [8, 256], strides = [1, 1]} : vector<8x512xf32> to vector<8x256xf32>
    %c0_17 = arith.constant 0 : index
    %c1024 = arith.constant 1024 : index
    %35 = vector.load %arg8[%c0_17, %c1024] : memref<1x3456xf32, #tpu.memory_space<vmem>>, vector<1x256xf32>
    %c0_18 = arith.constant 0 : index
    %c1280 = arith.constant 1280 : index
    %36 = vector.load %arg8[%c0_18, %c1280] : memref<1x3456xf32, #tpu.memory_space<vmem>>, vector<1x256xf32>
    %cst_19 = arith.constant dense<0.000000e+00> : vector<256xf32>
    %37 = vector.multi_reduction <add>, %34, %cst_19 [0] : vector<8x256xf32> to vector<256xf32>
    %38 = vector.shape_cast %37 : vector<256xf32> to vector<1x256xf32>
    %cst_20 = arith.constant 8.000000e+00 : f32
    %39 = vector.broadcast %cst_20 : f32 to vector<1x256xf32>
    %40 = arith.divf %38, %39 : vector<1x256xf32>
    %41 = arith.mulf %34, %34 : vector<8x256xf32>
    %cst_21 = arith.constant dense<0.000000e+00> : vector<256xf32>
    %42 = vector.multi_reduction <add>, %41, %cst_21 [0] : vector<8x256xf32> to vector<256xf32>
    %43 = vector.shape_cast %42 : vector<256xf32> to vector<1x256xf32>
    %cst_22 = arith.constant 8.000000e+00 : f32
    %44 = vector.broadcast %cst_22 : f32 to vector<1x256xf32>
    %45 = arith.divf %43, %44 : vector<1x256xf32>
    %46 = arith.mulf %40, %40 : vector<1x256xf32>
    %47 = arith.subf %45, %46 : vector<1x256xf32>
    %cst_23 = arith.constant 0.000000e+00 : f32
    %48 = vector.broadcast %cst_23 : f32 to vector<1x256xf32>
    %49 = arith.maximumf %47, %48 : vector<1x256xf32>
    %cst_24 = arith.constant 9.99999974E-6 : f32
    %50 = vector.broadcast %cst_24 : f32 to vector<1x256xf32>
    %51 = arith.addf %49, %50 : vector<1x256xf32>
    %52 = math.rsqrt %51 : vector<1x256xf32>
    %53 = arith.mulf %35, %52 : vector<1x256xf32>
    %54 = arith.mulf %40, %53 : vector<1x256xf32>
    %55 = arith.subf %36, %54 : vector<1x256xf32>
    %56 = vector.broadcast %53 : vector<1x256xf32> to vector<8x256xf32>
    %57 = arith.mulf %34, %56 : vector<8x256xf32>
    %58 = vector.broadcast %55 : vector<1x256xf32> to vector<8x256xf32>
    %59 = arith.addf %57, %58 : vector<8x256xf32>
    %cst_25 = arith.constant 0.000000e+00 : f32
    %60 = vector.broadcast %cst_25 : f32 to vector<8x256xf32>
    %61 = arith.maximumf %59, %60 : vector<8x256xf32>
    %62 = arith.truncf %61 : vector<8x256xf32> to vector<8x256xbf16>
    %c0_26 = arith.constant 0 : index
    %c0_27 = arith.constant 0 : index
    %63 = vector.load %arg4[%c0_26, %c0_27] : memref<256x256xbf16, #tpu.memory_space<vmem>>, vector<256x256xbf16>
    %cst_28 = arith.constant dense<0.000000e+00> : vector<8x256xf32>
    %64 = tpu.matmul %62, %63, %cst_28 {dimension_numbers = #tpu.dot_dimension_numbers<[1], [0], [0], [1], [0, 0, 1, 1], [], []>} : vector<8x256xbf16>, vector<256x256xbf16>, vector<8x256xf32> -> vector<8x256xf32>
    %c0_29 = arith.constant 0 : index
    %c1536 = arith.constant 1536 : index
    %65 = vector.load %arg8[%c0_29, %c1536] : memref<1x3456xf32, #tpu.memory_space<vmem>>, vector<1x256xf32>
    %c0_30 = arith.constant 0 : index
    %c1792 = arith.constant 1792 : index
    %66 = vector.load %arg8[%c0_30, %c1792] : memref<1x3456xf32, #tpu.memory_space<vmem>>, vector<1x256xf32>
    %cst_31 = arith.constant dense<0.000000e+00> : vector<256xf32>
    %67 = vector.multi_reduction <add>, %64, %cst_31 [0] : vector<8x256xf32> to vector<256xf32>
    %68 = vector.shape_cast %67 : vector<256xf32> to vector<1x256xf32>
    %cst_32 = arith.constant 8.000000e+00 : f32
    %69 = vector.broadcast %cst_32 : f32 to vector<1x256xf32>
    %70 = arith.divf %68, %69 : vector<1x256xf32>
    %71 = arith.mulf %64, %64 : vector<8x256xf32>
    %cst_33 = arith.constant dense<0.000000e+00> : vector<256xf32>
    %72 = vector.multi_reduction <add>, %71, %cst_33 [0] : vector<8x256xf32> to vector<256xf32>
    %73 = vector.shape_cast %72 : vector<256xf32> to vector<1x256xf32>
    %cst_34 = arith.constant 8.000000e+00 : f32
    %74 = vector.broadcast %cst_34 : f32 to vector<1x256xf32>
    %75 = arith.divf %73, %74 : vector<1x256xf32>
    %76 = arith.mulf %70, %70 : vector<1x256xf32>
    %77 = arith.subf %75, %76 : vector<1x256xf32>
    %cst_35 = arith.constant 0.000000e+00 : f32
    %78 = vector.broadcast %cst_35 : f32 to vector<1x256xf32>
    %79 = arith.maximumf %77, %78 : vector<1x256xf32>
    %cst_36 = arith.constant 9.99999974E-6 : f32
    %80 = vector.broadcast %cst_36 : f32 to vector<1x256xf32>
    %81 = arith.addf %79, %80 : vector<1x256xf32>
    %82 = math.rsqrt %81 : vector<1x256xf32>
    %83 = arith.mulf %65, %82 : vector<1x256xf32>
    %84 = arith.mulf %70, %83 : vector<1x256xf32>
    %85 = arith.subf %66, %84 : vector<1x256xf32>
    %86 = vector.broadcast %83 : vector<1x256xf32> to vector<8x256xf32>
    %87 = arith.mulf %64, %86 : vector<8x256xf32>
    %88 = vector.broadcast %85 : vector<1x256xf32> to vector<8x256xf32>
    %89 = arith.addf %87, %88 : vector<8x256xf32>
    %90 = vector.extract_strided_slice %33 {offsets = [0, 256], sizes = [8, 256], strides = [1, 1]} : vector<8x512xf32> to vector<8x256xf32>
    %c0_37 = arith.constant 0 : index
    %c2048 = arith.constant 2048 : index
    %91 = vector.load %arg8[%c0_37, %c2048] : memref<1x3456xf32, #tpu.memory_space<vmem>>, vector<1x256xf32>
    %92 = vector.broadcast %91 : vector<1x256xf32> to vector<8x256xf32>
    %93 = arith.addf %90, %92 : vector<8x256xf32>
    %94 = arith.addf %93, %89 : vector<8x256xf32>
    %cst_38 = arith.constant 0.000000e+00 : f32
    %95 = vector.broadcast %cst_38 : f32 to vector<8x256xf32>
    %96 = arith.maximumf %94, %95 : vector<8x256xf32>
    %97 = arith.truncf %96 : vector<8x256xf32> to vector<8x256xbf16>
    %c0_39 = arith.constant 0 : index
    %c0_40 = arith.constant 0 : index
    %98 = vector.load %arg5[%c0_39, %c0_40] : memref<256x64xbf16, #tpu.memory_space<vmem>>, vector<256x64xbf16>
    %cst_41 = arith.constant dense<0.000000e+00> : vector<8x64xf32>
    %99 = tpu.matmul %97, %98, %cst_41 {dimension_numbers = #tpu.dot_dimension_numbers<[1], [0], [0], [1], [0, 0, 1, 1], [], []>} : vector<8x256xbf16>, vector<256x64xbf16>, vector<8x64xf32> -> vector<8x64xf32>
    %c0_42 = arith.constant 0 : index
    %c2304 = arith.constant 2304 : index
    %100 = vector.load %arg8[%c0_42, %c2304] : memref<1x3456xf32, #tpu.memory_space<vmem>>, vector<1x64xf32>
    %c0_43 = arith.constant 0 : index
    %c2432 = arith.constant 2432 : index
    %101 = vector.load %arg8[%c0_43, %c2432] : memref<1x3456xf32, #tpu.memory_space<vmem>>, vector<1x64xf32>
    %cst_44 = arith.constant dense<0.000000e+00> : vector<64xf32>
    %102 = vector.multi_reduction <add>, %99, %cst_44 [0] : vector<8x64xf32> to vector<64xf32>
    %103 = vector.shape_cast %102 : vector<64xf32> to vector<1x64xf32>
    %cst_45 = arith.constant 8.000000e+00 : f32
    %104 = vector.broadcast %cst_45 : f32 to vector<1x64xf32>
    %105 = arith.divf %103, %104 : vector<1x64xf32>
    %106 = arith.mulf %99, %99 : vector<8x64xf32>
    %cst_46 = arith.constant dense<0.000000e+00> : vector<64xf32>
    %107 = vector.multi_reduction <add>, %106, %cst_46 [0] : vector<8x64xf32> to vector<64xf32>
    %108 = vector.shape_cast %107 : vector<64xf32> to vector<1x64xf32>
    %cst_47 = arith.constant 8.000000e+00 : f32
    %109 = vector.broadcast %cst_47 : f32 to vector<1x64xf32>
    %110 = arith.divf %108, %109 : vector<1x64xf32>
    %111 = arith.mulf %105, %105 : vector<1x64xf32>
    %112 = arith.subf %110, %111 : vector<1x64xf32>
    %cst_48 = arith.constant 0.000000e+00 : f32
    %113 = vector.broadcast %cst_48 : f32 to vector<1x64xf32>
    %114 = arith.maximumf %112, %113 : vector<1x64xf32>
    %cst_49 = arith.constant 9.99999974E-6 : f32
    %115 = vector.broadcast %cst_49 : f32 to vector<1x64xf32>
    %116 = arith.addf %114, %115 : vector<1x64xf32>
    %117 = math.rsqrt %116 : vector<1x64xf32>
    %118 = arith.mulf %100, %117 : vector<1x64xf32>
    %119 = arith.mulf %105, %118 : vector<1x64xf32>
    %120 = arith.subf %101, %119 : vector<1x64xf32>
    %121 = vector.broadcast %118 : vector<1x64xf32> to vector<8x64xf32>
    %122 = arith.mulf %99, %121 : vector<8x64xf32>
    %123 = vector.broadcast %120 : vector<1x64xf32> to vector<8x64xf32>
    %124 = arith.addf %122, %123 : vector<8x64xf32>
    %cst_50 = arith.constant 0.000000e+00 : f32
    %125 = vector.broadcast %cst_50 : f32 to vector<8x64xf32>
    %126 = arith.maximumf %124, %125 : vector<8x64xf32>
    %127 = arith.truncf %126 : vector<8x64xf32> to vector<8x64xbf16>
    %c0_51 = arith.constant 0 : index
    %c0_52 = arith.constant 0 : index
    %128 = vector.load %arg6[%c0_51, %c0_52] : memref<64x64xbf16, #tpu.memory_space<vmem>>, vector<64x64xbf16>
    %cst_53 = arith.constant dense<0.000000e+00> : vector<8x64xf32>
    %129 = tpu.matmul %127, %128, %cst_53 {dimension_numbers = #tpu.dot_dimension_numbers<[1], [0], [0], [1], [0, 0, 1, 1], [], []>} : vector<8x64xbf16>, vector<64x64xbf16>, vector<8x64xf32> -> vector<8x64xf32>
    %130 = vector.extract_strided_slice %129 {offsets = [0, 0], sizes = [8, 32], strides = [1, 1]} : vector<8x64xf32> to vector<8x32xf32>
    %c0_54 = arith.constant 0 : index
    %c2560 = arith.constant 2560 : index
    %131 = vector.load %arg8[%c0_54, %c2560] : memref<1x3456xf32, #tpu.memory_space<vmem>>, vector<1x32xf32>
    %c0_55 = arith.constant 0 : index
    %c2688 = arith.constant 2688 : index
    %132 = vector.load %arg8[%c0_55, %c2688] : memref<1x3456xf32, #tpu.memory_space<vmem>>, vector<1x32xf32>
    %cst_56 = arith.constant dense<0.000000e+00> : vector<32xf32>
    %133 = vector.multi_reduction <add>, %130, %cst_56 [0] : vector<8x32xf32> to vector<32xf32>
    %134 = vector.shape_cast %133 : vector<32xf32> to vector<1x32xf32>
    %cst_57 = arith.constant 8.000000e+00 : f32
    %135 = vector.broadcast %cst_57 : f32 to vector<1x32xf32>
    %136 = arith.divf %134, %135 : vector<1x32xf32>
    %137 = arith.mulf %130, %130 : vector<8x32xf32>
    %cst_58 = arith.constant dense<0.000000e+00> : vector<32xf32>
    %138 = vector.multi_reduction <add>, %137, %cst_58 [0] : vector<8x32xf32> to vector<32xf32>
    %139 = vector.shape_cast %138 : vector<32xf32> to vector<1x32xf32>
    %cst_59 = arith.constant 8.000000e+00 : f32
    %140 = vector.broadcast %cst_59 : f32 to vector<1x32xf32>
    %141 = arith.divf %139, %140 : vector<1x32xf32>
    %142 = arith.mulf %136, %136 : vector<1x32xf32>
    %143 = arith.subf %141, %142 : vector<1x32xf32>
    %cst_60 = arith.constant 0.000000e+00 : f32
    %144 = vector.broadcast %cst_60 : f32 to vector<1x32xf32>
    %145 = arith.maximumf %143, %144 : vector<1x32xf32>
    %cst_61 = arith.constant 9.99999974E-6 : f32
    %146 = vector.broadcast %cst_61 : f32 to vector<1x32xf32>
    %147 = arith.addf %145, %146 : vector<1x32xf32>
    %148 = math.rsqrt %147 : vector<1x32xf32>
    %149 = arith.mulf %131, %148 : vector<1x32xf32>
    %150 = arith.mulf %136, %149 : vector<1x32xf32>
    %151 = arith.subf %132, %150 : vector<1x32xf32>
    %152 = vector.broadcast %149 : vector<1x32xf32> to vector<8x32xf32>
    %153 = arith.mulf %130, %152 : vector<8x32xf32>
    %154 = vector.broadcast %151 : vector<1x32xf32> to vector<8x32xf32>
    %155 = arith.addf %153, %154 : vector<8x32xf32>
    %cst_62 = arith.constant 0.000000e+00 : f32
    %156 = vector.broadcast %cst_62 : f32 to vector<8x32xf32>
    %157 = arith.maximumf %155, %156 : vector<8x32xf32>
    %158 = arith.truncf %157 : vector<8x32xf32> to vector<8x32xbf16>
    %c0_63 = arith.constant 0 : index
    %c0_64 = arith.constant 0 : index
    %159 = vector.load %arg7[%c0_63, %c0_64] : memref<32x32xbf16, #tpu.memory_space<vmem>>, vector<32x32xbf16>
    %cst_65 = arith.constant dense<0.000000e+00> : vector<8x32xf32>
    %160 = tpu.matmul %158, %159, %cst_65 {dimension_numbers = #tpu.dot_dimension_numbers<[1], [0], [0], [1], [0, 0, 1, 1], [], []>} : vector<8x32xbf16>, vector<32x32xbf16>, vector<8x32xf32> -> vector<8x32xf32>
    %c0_66 = arith.constant 0 : index
    %c2816 = arith.constant 2816 : index
    %161 = vector.load %arg8[%c0_66, %c2816] : memref<1x3456xf32, #tpu.memory_space<vmem>>, vector<1x32xf32>
    %c0_67 = arith.constant 0 : index
    %c2944 = arith.constant 2944 : index
    %162 = vector.load %arg8[%c0_67, %c2944] : memref<1x3456xf32, #tpu.memory_space<vmem>>, vector<1x32xf32>
    %cst_68 = arith.constant dense<0.000000e+00> : vector<32xf32>
    %163 = vector.multi_reduction <add>, %160, %cst_68 [0] : vector<8x32xf32> to vector<32xf32>
    %164 = vector.shape_cast %163 : vector<32xf32> to vector<1x32xf32>
    %cst_69 = arith.constant 8.000000e+00 : f32
    %165 = vector.broadcast %cst_69 : f32 to vector<1x32xf32>
    %166 = arith.divf %164, %165 : vector<1x32xf32>
    %167 = arith.mulf %160, %160 : vector<8x32xf32>
    %cst_70 = arith.constant dense<0.000000e+00> : vector<32xf32>
    %168 = vector.multi_reduction <add>, %167, %cst_70 [0] : vector<8x32xf32> to vector<32xf32>
    %169 = vector.shape_cast %168 : vector<32xf32> to vector<1x32xf32>
    %cst_71 = arith.constant 8.000000e+00 : f32
    %170 = vector.broadcast %cst_71 : f32 to vector<1x32xf32>
    %171 = arith.divf %169, %170 : vector<1x32xf32>
    %172 = arith.mulf %166, %166 : vector<1x32xf32>
    %173 = arith.subf %171, %172 : vector<1x32xf32>
    %cst_72 = arith.constant 0.000000e+00 : f32
    %174 = vector.broadcast %cst_72 : f32 to vector<1x32xf32>
    %175 = arith.maximumf %173, %174 : vector<1x32xf32>
    %cst_73 = arith.constant 9.99999974E-6 : f32
    %176 = vector.broadcast %cst_73 : f32 to vector<1x32xf32>
    %177 = arith.addf %175, %176 : vector<1x32xf32>
    %178 = math.rsqrt %177 : vector<1x32xf32>
    %179 = arith.mulf %161, %178 : vector<1x32xf32>
    %180 = arith.mulf %166, %179 : vector<1x32xf32>
    %181 = arith.subf %162, %180 : vector<1x32xf32>
    %182 = vector.broadcast %179 : vector<1x32xf32> to vector<8x32xf32>
    %183 = arith.mulf %160, %182 : vector<8x32xf32>
    %184 = vector.broadcast %181 : vector<1x32xf32> to vector<8x32xf32>
    %185 = arith.addf %183, %184 : vector<8x32xf32>
    %186 = vector.extract_strided_slice %129 {offsets = [0, 32], sizes = [8, 32], strides = [1, 1]} : vector<8x64xf32> to vector<8x32xf32>
    %c0_74 = arith.constant 0 : index
    %c3072 = arith.constant 3072 : index
    %187 = vector.load %arg8[%c0_74, %c3072] : memref<1x3456xf32, #tpu.memory_space<vmem>>, vector<1x32xf32>
    %188 = vector.broadcast %187 : vector<1x32xf32> to vector<8x32xf32>
    %189 = arith.addf %186, %188 : vector<8x32xf32>
    %190 = arith.addf %189, %185 : vector<8x32xf32>
    %cst_75 = arith.constant 0.000000e+00 : f32
    %191 = vector.broadcast %cst_75 : f32 to vector<8x32xf32>
    %192 = arith.maximumf %190, %191 : vector<8x32xf32>
    %c0_76 = arith.constant 0 : index
    %c3200 = arith.constant 3200 : index
    %193 = vector.load %arg8[%c0_76, %c3200] : memref<1x3456xf32, #tpu.memory_space<vmem>>, vector<1x32xf32>
    %194 = vector.broadcast %193 : vector<1x32xf32> to vector<8x32xf32>
    %195 = arith.mulf %192, %194 : vector<8x32xf32>
    %cst_77 = arith.constant dense<0.000000e+00> : vector<8xf32>
    %196 = vector.multi_reduction <add>, %195, %cst_77 [1] : vector<8x32xf32> to vector<8xf32>
    %197 = vector.shape_cast %196 : vector<8xf32> to vector<8x1xf32>
    %c0_78 = arith.constant 0 : index
    %c3328 = arith.constant 3328 : index
    %198 = vector.load %arg8[%c0_78, %c3328] : memref<1x3456xf32, #tpu.memory_space<vmem>>, vector<1x1xf32>
    %199 = vector.broadcast %198 : vector<1x1xf32> to vector<8x1xf32>
    %200 = arith.addf %197, %199 : vector<8x1xf32>
    %c0_79 = arith.constant 0 : index
    %c0_80 = arith.constant 0 : index
    %c0_81 = arith.constant 0 : index
    %201 = vector.load %arg9[%c0_79, %c0_80, %c0_81] : memref<1x8x1xf32, #tpu.memory_space<vmem>>, vector<1x8x1xf32>
    %202 = vector.shape_cast %201 : vector<1x8x1xf32> to vector<8x1xf32>
    %203 = vector.shape_cast %200 : vector<8x1xf32> to vector<1x8x1xf32>
    tpu.vector_store %arg9[%c0_79, %c0_80, %c0_81], %203 {strides = array<i32>} : memref<1x8x1xf32, #tpu.memory_space<vmem>>, vector<1x8x1xf32>,
    return
  }
  func.func @transform_0(%arg0: i32) -> (i32, i32, i32) {
    %c0_i32 = arith.constant 0 : i32
    %c0_i32_0 = arith.constant 0 : i32
    %c0_i32_1 = arith.constant 0 : i32
    return %arg0, %c0_i32, %c0_i32_0 : i32, i32, i32
  }
  func.func @transform_1(%arg0: i32) -> (i32, i32) {
    %c0_i32 = arith.constant 0 : i32
    %c0_i32_0 = arith.constant 0 : i32
    %c0_i32_1 = arith.constant 0 : i32
    return %c0_i32, %c0_i32_0 : i32, i32
  }
  func.func @transform_2(%arg0: i32) -> (i32, i32) {
    %c0_i32 = arith.constant 0 : i32
    %c0_i32_0 = arith.constant 0 : i32
    %c0_i32_1 = arith.constant 0 : i32
    return %c0_i32, %c0_i32_0 : i32, i32
  }
  func.func @transform_3(%arg0: i32) -> (i32, i32) {
    %c0_i32 = arith.constant 0 : i32
    %c0_i32_0 = arith.constant 0 : i32
    %c0_i32_1 = arith.constant 0 : i32
    return %c0_i32, %c0_i32_0 : i32, i32
  }
  func.func @transform_4(%arg0: i32) -> (i32, i32) {
    %c0_i32 = arith.constant 0 : i32
    %c0_i32_0 = arith.constant 0 : i32
    %c0_i32_1 = arith.constant 0 : i32
    return %c0_i32, %c0_i32_0 : i32, i32
  }
  func.func @transform_5(%arg0: i32) -> (i32, i32) {
    %c0_i32 = arith.constant 0 : i32
    %c0_i32_0 = arith.constant 0 : i32
    %c0_i32_1 = arith.constant 0 : i32
    return %c0_i32, %c0_i32_0 : i32, i32
  }
  func.func @transform_6(%arg0: i32) -> (i32, i32) {
    %c0_i32 = arith.constant 0 : i32
    %c0_i32_0 = arith.constant 0 : i32
    %c0_i32_1 = arith.constant 0 : i32
    return %c0_i32, %c0_i32_0 : i32, i32
  }
  func.func @transform_7(%arg0: i32) -> (i32, i32) {
    %c0_i32 = arith.constant 0 : i32
    %c0_i32_0 = arith.constant 0 : i32
    %c0_i32_1 = arith.constant 0 : i32
    return %c0_i32, %c0_i32_0 : i32, i32
  }
  func.func @transform_8(%arg0: i32) -> (i32, i32, i32) {
    %c0_i32 = arith.constant 0 : i32
    %c0_i32_0 = arith.constant 0 : i32
    %c0_i32_1 = arith.constant 0 : i32
    return %arg0, %c0_i32, %c0_i32_0 : i32, i32, i32
  }
}

</mosaic_0001>

<bundles_post_ra>
// kernel: tpu_custom_call.1
= control target key start
LH: loop header
LB: loop body
LE: loop exit
PB: predicated region body
PF: predicated region fallthrough
CT: control target
= control target key end

     0   :  { %13 = vsyncpa [#allocation3], 0  ;;  %s4085_s0 = inlined_call_operand.vmem [shape: bf16[1,8,384], index: 0, kind: input, shape index: {}]   ;;  %s4086_s1 = inlined_call_operand.hbm [shape: bf16[384,512], index: 1, kind: input, shape index: {}]   ;;  %s4087_s2 = inlined_call_operand.hbm [shape: bf16[512,512], index: 2, kind: input, shape index: {}]   ;;  %s4088_s3 = inlined_call_operand.hbm [shape: bf16[256,256], index: 3, kind: input, shape index: {}]   ;;  %s4089_s4 = inlined_call_operand.vmem [shape: bf16[256,64], index: 4, kind: input, shape index: {}]   ;;  %s4090_s5 = inlined_call_operand.vmem [shape: bf16[64,64], index: 5, kind: input, shape index: {}]   ;;  %s4091_s6 = inlined_call_operand.vmem [shape: bf16[32,32], index: 6, kind: input, shape index: {}]   ;;  %s4092_s7 = inlined_call_operand.vmem [shape: f32[1,3456], index: 7, kind: input, shape index: {}]   ;;  %s4093_s8 = inlined_call_operand.vmem [shape: f32[1,8,1], index: 8, kind: output, shape index: {}]  }
   0x1   :  { %14 = vsyncpa [#allocation5], 0  ;;  %s3758_s27 = smov [#allocation4]   ;;  %s3759_s29 = smov [#allocation2]  }
   0x2   :  { %s34_s28 = sshll.u32 %s3758_s27, 4  ;;  %s22_s30 = sshll.u32 %s3759_s29, 4  ;;  %s35_s28 = int_to_ptr.vmem [resolvable:$true] %s34_s28  ;;  %s23_s30 = int_to_ptr.vmem [resolvable:$true] %s22_s30 }
   0x3   :  { %s3702_s9 = scalar_lea.vmem %s35_s28, 16384  ;;  %p3707_p1 = scmp.lt.s32.totalorder %s35_s28, %s35_s28 }
   0x4   :  { %p3703_p0 = scmp.ne.s32.totalorder %s35_s28, %s3702_s9  ;;  %p3708_p2 = scmp.lt.s32.totalorder %s3702_s9, %s3702_s9 }
   0x6   :  { %p3709_p3 = por %p3708_p2, %p3707_p1 }
   0x8   :  { %p3710_p4 = pnand %p3709_p3, %p3703_p0 }
   0xa   :  { %3713 = shalt.err (!%p3710_p4)
}
   0xb   :  { %s3760_s10 = smov 256   ;;  %s3761_s11 = smov 16  }
   0xc   :  { %40 = dma.hbm_to_vmem [thread:$0]  %s4087_s2, 16384, %s35_s28, [#allocation5], %s3760_s10, %s3760_s10, %s3761_s11  }
   0xd   :  { %s3722_s14 = scalar_lea.vmem %s23_s30, 12288  ;;  %p3727_p6 = scmp.lt.s32.totalorder %s23_s30, %s23_s30 }
   0xe   :  { %p3723_p5 = scmp.ne.s32.totalorder %s23_s30, %s3722_s14  ;;  %p3728_p7 = scmp.lt.s32.totalorder %s3722_s14, %s3722_s14 }
  0x10   :  { %p3729_p8 = por %p3728_p7, %p3727_p6 }
  0x12   :  { %p3730_p9 = pnand %p3729_p8, %p3723_p5 }
  0x14   :  { %3733 = shalt.err (!%p3730_p9)
}
  0x15   :  { %28 = dma.hbm_to_vmem [thread:$0]  %s4086_s1, 12288, %s23_s30, [#allocation3], %s3760_s10, %s3760_s10, %s3761_s11  }
  0x16   :  { %s3762_s17 = smov [#allocation6]  }
  0x17   :  { %s46_s18 = sshll.u32 %s3762_s17, 4  ;;  %s47_s18 = int_to_ptr.vmem [resolvable:$true] %s46_s18 }
  0x18   :  { %s3742_s19 = scalar_lea.vmem %s47_s18, 4096  ;;  %p3747_p11 = scmp.lt.s32.totalorder %s47_s18, %s47_s18 }
  0x19   :  { %p3743_p10 = scmp.ne.s32.totalorder %s47_s18, %s3742_s19  ;;  %p3748_p12 = scmp.lt.s32.totalorder %s3742_s19, %s3742_s19 }
  0x1b   :  { %p3749_p13 = por %p3748_p12, %p3747_p11 }
  0x1d   :  { %p3750_p0 = pnand %p3749_p13, %p3743_p10 }
  0x1f   :  { %3753 = shalt.err (!%p3750_p0)
}
  0x20   :  { %s3763_s2 = smov 128   ;;  %s3764_s20 = smov 8  }
  0x21   :  { %52 = dma.hbm_to_vmem [thread:$0]  %s4088_s3, 4096, %s47_s18, [#allocation5], %s3763_s2, %s3763_s2, %s3764_s20  }
  0x22   :  { %3754 = dma.done.wait [#allocation3], 12288  }
  0x23   :  { %3755 = vsyncadd [#allocation3], 4294955008 }
  0x24   :  { %3756 = dma.done.wait [#allocation5], 20480  }
  0x25   :  { %3757 = vsyncadd [#allocation5], 4294946816  ;;  %v3765_v0 = vmov 0   ;;  %v3263_v1 = vld [vmem:[#allocation2 + $0xe4] ss:$16 sps:$4 sm:$0xff]   ;;  %vm3768_vm0 = vmmov 0  }
  0x26   :  { %733 = vmatprep.mubr.bf16.mxu1 %v3765_v0  ;;  %v3265_v2 = vld [vmem:[#allocation2 + $0x2e4] ss:$16 sps:$4 sm:$0xff]   ;;  %660 = vmatprep.subr.bf16.mxu0 %v3263_v1  ;;  %v3267_v3 = vld [vmem:[#allocation2 + $0xe0] ss:$16 sps:$4 sm:$0xff]   ;;  %v3316_v34 = vld [vmem:[#allocation2 + $0xec] ss:$16 sps:$4 sm:$0xff]  }
  0x27   :  { %v3268_v4 = vld [vmem:[#allocation2 + $0x2e0] ss:$16 sps:$4 sm:$0xff]   ;;  %701 = vmatprep.subr.bf16.mxu1 %v3265_v2  ;;  %v3269_v5 = vld [vmem:[#allocation2 + $0xc4] ss:$16 sps:$4 sm:$0xff]   ;;  %661 = vmatpush1.bf16.msra.mxu0 %v3267_v3  ;;  %v3829_v35 = vld [vmem:[%s4085_s0 + $0x8] ss:$0 sps:$4 sm:$0xff]  }
  0x28   :  { %702 = vmatpush1.bf16.msra.mxu1 %v3268_v4  ;;  %v3271_v6 = vld [vmem:[#allocation2 + $0x2c4] ss:$16 sps:$4 sm:$0xff]   ;;  %v3273_v7 = vld [vmem:[#allocation2 + $0xc0] ss:$16 sps:$4 sm:$0xff]   ;;  %662 = vmatprep.subr.bf16.mxu0 %v3269_v5  ;;  %v3314_v36 = vld [vmem:[#allocation2 + $0xe8] ss:$16 sps:$4 sm:$0xff]  }
  0x29   :  { %v3274_v8 = vld [vmem:[#allocation2 + $0x2c0] ss:$16 sps:$4 sm:$0xff]   ;;  %703 = vmatprep.subr.bf16.mxu1 %v3271_v6  ;;  %v3275_v9 = vld [vmem:[#allocation2 + $0xa4] ss:$16 sps:$4 sm:$0xff]   ;;  %v3322_v39 = vld [vmem:[#allocation2 + $0xcc] ss:$16 sps:$4 sm:$0xff]  }
  0x2a   :  { %v3277_v10 = vld [vmem:[#allocation2 + $0x2a4] ss:$16 sps:$4 sm:$0xff]   ;;  %v3279_v11 = vld [vmem:[#allocation2 + $0xa0] ss:$16 sps:$4 sm:$0xff]   ;;  %v3320_v40 = vld [vmem:[#allocation2 + $0xc8] ss:$16 sps:$4 sm:$0xff]  }
  0x2b   :  { %v3280_v12 = vld [vmem:[#allocation2 + $0x2a0] ss:$16 sps:$4 sm:$0xff]   ;;  %663 = vmatpush1.bf16.msra.mxu0 %v3273_v7  ;;  %v3281_v13 = vld [vmem:[#allocation2 + $0x84] ss:$16 sps:$4 sm:$0xff]   ;;  %v3328_v43 = vld [vmem:[#allocation2 + $0xac] ss:$16 sps:$4 sm:$0xff]  }
  0x2c   :  { %704 = vmatpush1.bf16.msra.mxu1 %v3274_v8  ;;  %664 = vmatprep.subr.bf16.mxu0 %v3275_v9  ;;  %v3283_v14 = vld [vmem:[#allocation2 + $0x284] ss:$16 sps:$4 sm:$0xff]   ;;  %v3285_v15 = vld [vmem:[#allocation2 + $0x80] ss:$16 sps:$4 sm:$0xff]   ;;  %v3326_v44 = vld [vmem:[#allocation2 + $0xa8] ss:$16 sps:$4 sm:$0xff]  }
  0x2d   :  { %705 = vmatprep.subr.bf16.mxu1 %v3277_v10  ;;  %v3286_v16 = vld [vmem:[#allocation2 + $0x280] ss:$16 sps:$4 sm:$0xff]   ;;  %v3287_v17 = vld [vmem:[#allocation2 + $0x64] ss:$16 sps:$4 sm:$0xff]   ;;  %v3334_v47 = vld [vmem:[#allocation2 + $0x8c] ss:$16 sps:$4 sm:$0xff]  }
  0x2e   :  { %v3289_v18 = vld [vmem:[#allocation2 + $0x264] ss:$16 sps:$4 sm:$0xff]   ;;  %v3291_v19 = vld [vmem:[#allocation2 + $0x60] ss:$16 sps:$4 sm:$0xff]   ;;  %v3332_v48 = vld [vmem:[#allocation2 + $0x88] ss:$16 sps:$4 sm:$0xff]  }
  0x2f   :  { %665 = vmatpush1.bf16.msra.mxu0 %v3279_v11  ;;  %v3292_v20 = vld [vmem:[#allocation2 + $0x260] ss:$16 sps:$4 sm:$0xff]   ;;  %v3293_v21 = vld [vmem:[#allocation2 + $0x44] ss:$16 sps:$4 sm:$0xff]   ;;  %v3340_v53 = vld [vmem:[#allocation2 + $0x6c] ss:$16 sps:$4 sm:$0xff]  }
  0x30   :  { %706 = vmatpush1.bf16.msra.mxu1 %v3280_v12  ;;  %666 = vmatprep.subr.bf16.mxu0 %v3281_v13  ;;  %v3295_v22 = vld [vmem:[#allocation2 + $0x244] ss:$16 sps:$4 sm:$0xff]   ;;  %v3297_v23 = vld [vmem:[#allocation2 + $0x40] ss:$16 sps:$4 sm:$0xff]   ;;  %v3338_v54 = vld [vmem:[#allocation2 + $0x68] ss:$16 sps:$4 sm:$0xff]  }
  0x31   :  { %707 = vmatprep.subr.bf16.mxu1 %v3283_v14  ;;  %v3298_v24 = vld [vmem:[#allocation2 + $0x240] ss:$16 sps:$4 sm:$0xff]   ;;  %v3299_v25 = vld [vmem:[#allocation2 + $0x24] ss:$16 sps:$4 sm:$0xff]   ;;  %v3346_v57 = vld [vmem:[#allocation2 + $0x4c] ss:$16 sps:$4 sm:$0xff]  }
  0x32   :  { %v3301_v26 = vld [vmem:[#allocation2 + $0x224] ss:$16 sps:$4 sm:$0xff]   ;;  %v3303_v27 = vld [vmem:[#allocation2 + $0x20] ss:$16 sps:$4 sm:$0xff]   ;;  %v3344_v58 = vld [vmem:[#allocation2 + $0x48] ss:$16 sps:$4 sm:$0xff]  }
  0x33   :  { %667 = vmatpush1.bf16.msra.mxu0 %v3285_v15  ;;  %v3304_v28 = vld [vmem:[#allocation2 + $0x220] ss:$16 sps:$4 sm:$0xff]   ;;  %v3305_v29 = vld [vmem:[#allocation2 + $0x4] ss:$16 sps:$4 sm:$0xff]   ;;  %v3352_v61 = vld [vmem:[#allocation2 + $0x2c] ss:$16 sps:$4 sm:$0xff]  }
  0x34   :  { %708 = vmatpush1.bf16.msra.mxu1 %v3286_v16  ;;  %668 = vmatprep.subr.bf16.mxu0 %v3287_v17  ;;  %v3307_v30 = vld [vmem:[#allocation2 + $0x204] ss:$16 sps:$4 sm:$0xff]   ;;  %v3309_v31 = vld [vmem:[#allocation2] ss:$16 sps:$4 sm:$0xff]   ;;  %v3350_v62 = vld [vmem:[#allocation2 + $0x28] ss:$16 sps:$4 sm:$0xff]  }
  0x35   :  { %709 = vmatprep.subr.bf16.mxu1 %v3289_v18  ;;  %v3310_v32 = vld [vmem:[#allocation2 + $0x200] ss:$16 sps:$4 sm:$0xff]   ;;  %v3311_v33 = vld [vmem:[#allocation2 + $0x1e4] ss:$16 sps:$4 sm:$0xff]   ;;  %v3358_v2 = vld [vmem:[#allocation2 + $0xc] ss:$16 sps:$4 sm:$0xff]  }
  0x36   :  { %v3317_v37 = vld [vmem:[#allocation2 + $0x1e0] ss:$16 sps:$4 sm:$0xff]   ;;  %v3318_v38 = vld [vmem:[#allocation2 + $0x1c4] ss:$16 sps:$4 sm:$0xff]   ;;  %v3356_v3 = vld [vmem:[#allocation2 + $0x8] ss:$16 sps:$4 sm:$0xff]  }
  0x37   :  { %669 = vmatpush1.bf16.msra.mxu0 %v3291_v19  ;;  %v3323_v41 = vld [vmem:[#allocation2 + $0x1c0] ss:$16 sps:$4 sm:$0xff]   ;;  %v3324_v42 = vld [vmem:[#allocation2 + $0x1a4] ss:$16 sps:$4 sm:$0xff]   ;;  %v3364_v5 = vld [vmem:[#allocation2 + $0x1ec] ss:$16 sps:$4 sm:$0xff]  }
  0x38   :  { %710 = vmatpush1.bf16.msra.mxu1 %v3292_v20  ;;  %670 = vmatprep.subr.bf16.mxu0 %v3293_v21  ;;  %v3329_v45 = vld [vmem:[#allocation2 + $0x1a0] ss:$16 sps:$4 sm:$0xff]   ;;  %v3330_v46 = vld [vmem:[#allocation2 + $0x184] ss:$16 sps:$4 sm:$0xff]   ;;  %v3367_v6 = vld [vmem:[#allocation2 + $0x2ec] ss:$16 sps:$4 sm:$0xff]  }
  0x39   :  { %711 = vmatprep.subr.bf16.mxu1 %v3295_v22  ;;  %v71_v49 = vld [vmem:[%s4085_s0] sm:$0xff]  ;;  %v3362_v8 = vld [vmem:[#allocation2 + $0x1e8] ss:$16 sps:$4 sm:$0xff]   ;;  %v3370_v10 = vld [vmem:[#allocation2 + $0x1cc] ss:$16 sps:$4 sm:$0xff]   ;;  %s3769_s27 = smov 32  }
  0x3a   :  { %v3335_v50 = vld [vmem:[#allocation2 + $0x180] ss:$16 sps:$4 sm:$0xff]   ;;  %v3336_v51 = vld [vmem:[#allocation2 + $0x164] ss:$16 sps:$4 sm:$0xff]   ;;  %v2915_v52 = vcombine.high %v71_v49, %v71_v49  ;;  %v3835_v7 = vcombine.low %v71_v49, %v71_v49  ;;  %v3365_v9 = vld [vmem:[#allocation2 + $0x2e8] ss:$16 sps:$4 sm:$0xff]  }
  0x3b   :  { %671 = vmatpush1.bf16.msra.mxu0 %v3297_v23  ;;  %v3341_v55 = vld [vmem:[#allocation2 + $0x160] ss:$16 sps:$4 sm:$0xff]   ;;  %v3342_v56 = vld [vmem:[#allocation2 + $0x144] ss:$16 sps:$4 sm:$0xff]   ;;  %v3373_v11 = vld [vmem:[#allocation2 + $0x2cc] ss:$16 sps:$4 sm:$0xff]  }
  0x3c   :  { %712 = vmatpush1.bf16.msra.mxu1 %v3298_v24  ;;  %672 = vmatprep.subr.bf16.mxu0 %v3299_v25  ;;  %v3347_v59 = vld [vmem:[#allocation2 + $0x140] ss:$16 sps:$4 sm:$0xff]   ;;  %v3348_v60 = vld [vmem:[#allocation2 + $0x124] ss:$16 sps:$4 sm:$0xff]   ;;  %v3368_v12 = vld [vmem:[#allocation2 + $0x1c8] ss:$16 sps:$4 sm:$0xff]  }
  0x3d   :  { %713 = vmatprep.subr.bf16.mxu1 %v3301_v26  ;;  %692 = vmatprep.mubr.bf16.mxu0 %v2915_v52  ;;  %v3353_v63 = vld [vmem:[#allocation2 + $0x120] ss:$16 sps:$4 sm:$0xff]   ;;  %v3354_v1 = vld [vmem:[#allocation2 + $0x104] ss:$16 sps:$4 sm:$0xff]   ;;  %v3371_v13 = vld [vmem:[#allocation2 + $0x2c8] ss:$16 sps:$4 sm:$0xff]  }
  0x3e   :  { %v3359_v4 = vld [vmem:[#allocation2 + $0x100] ss:$16 sps:$4 sm:$0xff]   ;;  %v3376_v14 = vld [vmem:[#allocation2 + $0x1ac] ss:$16 sps:$4 sm:$0xff]   ;;  %v3374_v16 = vld [vmem:[#allocation2 + $0x1a8] ss:$16 sps:$4 sm:$0xff]  }
  0x3f   :  { %673 = vmatpush1.bf16.msra.mxu0 %v3303_v27  ;;  %v3379_v15 = vld [vmem:[#allocation2 + $0x2ac] ss:$16 sps:$4 sm:$0xff]   ;;  %v3377_v17 = vld [vmem:[#allocation2 + $0x2a8] ss:$16 sps:$4 sm:$0xff]   ;;  %v3430_v49 = vld [vmem:[#allocation4 + $0x84] ss:$16 sps:$4 sm:$0xff]  }
  0x40   :  { %714 = vmatpush1.bf16.msra.mxu1 %v3304_v28  ;;  %674 = vmatprep.subr.bf16.mxu0 %v3305_v29  ;;  %v3382_v18 = vld [vmem:[#allocation2 + $0x18c] ss:$16 sps:$4 sm:$0xff]   ;;  %v3380_v20 = vld [vmem:[#allocation2 + $0x188] ss:$16 sps:$4 sm:$0xff]   ;;  %vm2604_vm1 = vcmask 523264   ;;  %vm2723_vm2 = vcmask 261120  }
  0x41   :  { %715 = vmatprep.subr.bf16.mxu1 %v3307_v30  ;;  %v3385_v19 = vld [vmem:[#allocation2 + $0x28c] ss:$16 sps:$4 sm:$0xff]   ;;  %v3383_v21 = vld [vmem:[#allocation2 + $0x288] ss:$16 sps:$4 sm:$0xff]   ;;  %s3770_s20 = smov 96   ;;  %vm2906_vm3 = vcmask 7168  }
  0x42   :  { %v3388_v22 = vld [vmem:[#allocation2 + $0x16c] ss:$16 sps:$4 sm:$0xff]   ;;  %v3386_v24 = vld [vmem:[#allocation2 + $0x168] ss:$16 sps:$4 sm:$0xff]  }
  0x43   :  { %675 = vmatpush1.bf16.msra.mxu0 %v3309_v31  ;;  %v3391_v23 = vld [vmem:[#allocation2 + $0x26c] ss:$16 sps:$4 sm:$0xff]   ;;  %v3389_v25 = vld [vmem:[#allocation2 + $0x268] ss:$16 sps:$4 sm:$0xff]  }
  0x44   :  { %716 = vmatpush1.bf16.msra.mxu1 %v3310_v32  ;;  %676 = vmatprep.subr.bf16.mxu0 %v3311_v33  ;;  %v3394_v26 = vld [vmem:[#allocation2 + $0x14c] ss:$16 sps:$4 sm:$0xff]   ;;  %v3395_v28 = vld [vmem:[#allocation2 + $0x248] ss:$16 sps:$4 sm:$0xff]  }
  0x45   :  { %742 = vmatprep.subr.bf16.mxu1 %v3316_v34  ;;  %v3397_v27 = vld [vmem:[#allocation2 + $0x24c] ss:$16 sps:$4 sm:$0xff]   ;;  %v3398_v31 = vld [vmem:[#allocation2 + $0x128] ss:$16 sps:$4 sm:$0xff]  }
  0x46   :  { %v3400_v29 = vld [vmem:[#allocation2 + $0x12c] ss:$16 sps:$4 sm:$0xff]   ;;  %v3401_v32 = vld [vmem:[#allocation2 + $0x228] ss:$16 sps:$4 sm:$0xff]  }
  0x47   :  { %734 = vmatmul.mubr.bf16.vlgmr.msra.gmra.mxu1 %v3829_v35  ;;  %677 = vmatpush2.bf16.msra.mxu0 %v3317_v37  ;;  %v3403_v30 = vld [vmem:[#allocation2 + $0x22c] ss:$16 sps:$4 sm:$0xff]   ;;  %v3407_v37 = vld [vmem:[#allocation2 + $0x208] ss:$16 sps:$4 sm:$0xff]  }
  0x48   :  { %743 = vmatpush1.bf16.msra.mxu1 %v3314_v36  ;;  %678 = vmatprep.subr.bf16.mxu0 %v3318_v38  ;;  %v3406_v33 = vld [vmem:[#allocation2 + $0x10c] ss:$16 sps:$4 sm:$0xff]   ;;  %v3404_v36 = vld [vmem:[#allocation2 + $0x108] ss:$16 sps:$4 sm:$0xff]   ;;  %v3412_v38 = vld [vmem:[#allocation4 + $0xe4] ss:$16 sps:$4 sm:$0xff]  }
  0x49   :  { %744 = vmatprep.subr.bf16.mxu1 %v3322_v39  ;;  %774 = vmatprep.mubr.bf16.mxu1 %v2915_v52  ;;  %v3409_v34 = vld [vmem:[#allocation2 + $0x20c] ss:$16 sps:$4 sm:$0xff]   ;;  %v3415_v39 = vld [vmem:[#allocation4 + $0x2e4] ss:$16 sps:$4 sm:$0xff]   ;;  %v3431_v52 = vld [vmem:[#allocation4 + $0x280] ss:$16 sps:$4 sm:$0xff]  }
  0x4b   :  { %679 = vmatpush2.bf16.msra.mxu0 %v3323_v41  ;;  %v3413_v41 = vld [vmem:[#allocation4 + $0x2e0] ss:$16 sps:$4 sm:$0xff]  }
  0x4c   :  { %745 = vmatpush1.bf16.msra.mxu1 %v3320_v40  ;;  %680 = vmatprep.subr.bf16.mxu0 %v3324_v42  ;;  %v3410_v40 = vld [vmem:[#allocation4 + $0xe0] ss:$16 sps:$4 sm:$0xff]   ;;  %v3418_v42 = vld [vmem:[#allocation4 + $0xc4] ss:$16 sps:$4 sm:$0xff]  }
  0x4d   :  { %746 = vmatprep.subr.bf16.mxu1 %v3328_v43  ;;  %v3421_v43 = vld [vmem:[#allocation4 + $0x2c4] ss:$16 sps:$4 sm:$0xff]  }
  0x4f   :  { %681 = vmatpush2.bf16.msra.mxu0 %v3329_v45  ;;  %v3419_v45 = vld [vmem:[#allocation4 + $0x2c0] ss:$16 sps:$4 sm:$0xff]  }
  0x50   :  { %747 = vmatpush1.bf16.msra.mxu1 %v3326_v44  ;;  %682 = vmatprep.subr.bf16.mxu0 %v3330_v46  ;;  %v3416_v44 = vld [vmem:[#allocation4 + $0xc0] ss:$16 sps:$4 sm:$0xff]   ;;  %v3424_v46 = vld [vmem:[#allocation4 + $0xa4] ss:$16 sps:$4 sm:$0xff]  }
  0x51   :  { %748 = vmatprep.subr.bf16.mxu1 %v3334_v47  ;;  %v3427_v47 = vld [vmem:[#allocation4 + $0x2a4] ss:$16 sps:$4 sm:$0xff]  }
  0x53   :  { %683 = vmatpush2.bf16.msra.mxu0 %v3335_v50  ;;  %v3433_v50 = vld [vmem:[#allocation4 + $0x284] ss:$16 sps:$4 sm:$0xff]  }
  0x54   :  { %749 = vmatpush1.bf16.msra.mxu1 %v3332_v48  ;;  %684 = vmatprep.subr.bf16.mxu0 %v3336_v51  ;;  %v3422_v48 = vld [vmem:[#allocation4 + $0xa0] ss:$16 sps:$4 sm:$0xff]  }
  0x55   :  { %750 = vmatprep.subr.bf16.mxu1 %v3340_v53  ;;  %v3428_v51 = vld [vmem:[#allocation4 + $0x80] ss:$16 sps:$4 sm:$0xff]   ;;  %v3436_v53 = vld [vmem:[#allocation4 + $0x64] ss:$16 sps:$4 sm:$0xff]  }
  0x57   :  { %685 = vmatpush2.bf16.msra.mxu0 %v3341_v55  ;;  %v3434_v55 = vld [vmem:[#allocation4 + $0x60] ss:$16 sps:$4 sm:$0xff]  }
  0x58   :  { %751 = vmatpush1.bf16.msra.mxu1 %v3338_v54  ;;  %686 = vmatprep.subr.bf16.mxu0 %v3342_v56  ;;  %v3439_v54 = vld [vmem:[#allocation4 + $0x264] ss:$16 sps:$4 sm:$0xff]   ;;  %v3437_v56 = vld [vmem:[#allocation4 + $0x260] ss:$16 sps:$4 sm:$0xff]  }
  0x59   :  { %752 = vmatprep.subr.bf16.mxu1 %v3346_v57  ;;  %v3440_v57 = vld [vmem:[#allocation4 + $0x40] ss:$16 sps:$4 sm:$0xff]  }
  0x5b   :  { %687 = vmatpush2.bf16.msra.mxu0 %v3347_v59  ;;  %v3443_v59 = vld [vmem:[#allocation4 + $0x240] ss:$16 sps:$4 sm:$0xff]  }
  0x5c   :  { %753 = vmatpush1.bf16.msra.mxu1 %v3344_v58  ;;  %688 = vmatprep.subr.bf16.mxu0 %v3348_v60  ;;  %v3442_v58 = vld [vmem:[#allocation4 + $0x44] ss:$16 sps:$4 sm:$0xff]  }
  0x5d   :  { %754 = vmatprep.subr.bf16.mxu1 %v3352_v61  ;;  %v3445_v60 = vld [vmem:[#allocation4 + $0x244] ss:$16 sps:$4 sm:$0xff]  }
  0x5e   :  { %v3448_v61 = vld [vmem:[#allocation4 + $0x24] ss:$16 sps:$4 sm:$0xff]  }
  0x5f   :  { %689 = vmatpush2.bf16.msra.mxu0 %v3353_v63  ;;  %v3446_v63 = vld [vmem:[#allocation4 + $0x20] ss:$16 sps:$4 sm:$0xff]  }
  0x60   :  { %755 = vmatpush1.bf16.msra.mxu1 %v3350_v62  ;;  %690 = vmatprep.subr.bf16.mxu0 %v3354_v1  ;;  %v3451_v62 = vld [vmem:[#allocation4 + $0x224] ss:$16 sps:$4 sm:$0xff]   ;;  %v3449_v1 = vld [vmem:[#allocation4 + $0x220] ss:$16 sps:$4 sm:$0xff]  }
  0x61   :  { %756 = vmatprep.subr.bf16.mxu1 %v3358_v2  ;;  %v3454_v2 = vld [vmem:[#allocation4 + $0x4] ss:$16 sps:$4 sm:$0xff]  }
  0x63   :  { %691 = vmatpush2.bf16.msra.mxu0 %v3359_v4  ;;  %v3452_v4 = vld [vmem:[#allocation4] ss:$16 sps:$4 sm:$0xff]  }
  0x64   :  { %757 = vmatpush1.bf16.msra.mxu1 %v3356_v3  ;;  %783 = vmatprep.subr.bf16.mxu0 %v3367_v6  ;;  %v3457_v3 = vld [vmem:[#allocation4 + $0x204] ss:$16 sps:$4 sm:$0xff]  }
  0x65   :  { %758 = vmatprep.subr.bf16.mxu1 %v3364_v5  ;;  %v3455_v5 = vld [vmem:[#allocation4 + $0x200] ss:$16 sps:$4 sm:$0xff]   ;;  %v3460_v6 = vld [vmem:[#allocation4 + $0x1e4] ss:$16 sps:$4 sm:$0xff]  }
  0x66   :  { %693 = vmatmul.mubr.bf16.vlgmr.msra.gmra.mxu0 %v3835_v7 }
  0x67   :  { %784 = vmatpush1.bf16.msra.mxu0 %v3365_v9  ;;  %815 = vmatprep.mubr.bf16.mxu0 %v3765_v0  ;;  %v3392_v0 = vld [vmem:[#allocation2 + $0x148] ss:$16 sps:$4 sm:$0xff]   ;;  %v3461_v9 = vld [vmem:[#allocation4 + $0x3e0] ss:$16 sps:$4 sm:$0xff]  }
  0x68   :  { %759 = vmatpush2.bf16.msra.mxu1 %v3362_v8  ;;  %785 = vmatprep.subr.bf16.mxu0 %v3373_v11  ;;  %v3458_v8 = vld [vmem:[#allocation4 + $0x1e0] ss:$16 sps:$4 sm:$0xff]   ;;  %v3469_v11 = vld [vmem:[#allocation4 + $0x3c4] ss:$16 sps:$4 sm:$0xff]  }
  0x69   :  { %760 = vmatprep.subr.bf16.mxu1 %v3370_v10  ;;  %v3466_v10 = vld [vmem:[#allocation4 + $0x1c4] ss:$16 sps:$4 sm:$0xff]  }
  0x6b   :  { %786 = vmatpush1.bf16.msra.mxu0 %v3371_v13  ;;  %v3467_v13 = vld [vmem:[#allocation4 + $0x3c0] ss:$16 sps:$4 sm:$0xff]  }
  0x6c   :  { %761 = vmatpush2.bf16.msra.mxu1 %v3368_v12  ;;  %787 = vmatprep.subr.bf16.mxu0 %v3379_v15  ;;  %v3464_v12 = vld [vmem:[#allocation4 + $0x1c0] ss:$16 sps:$4 sm:$0xff]   ;;  %v3475_v15 = vld [vmem:[#allocation4 + $0x3a4] ss:$16 sps:$4 sm:$0xff]  }
  0x6d   :  { %762 = vmatprep.subr.bf16.mxu1 %v3376_v14  ;;  %v3472_v14 = vld [vmem:[#allocation4 + $0x1a4] ss:$16 sps:$4 sm:$0xff]  }
  0x6f   :  { %788 = vmatpush1.bf16.msra.mxu0 %v3377_v17  ;;  %v3473_v17 = vld [vmem:[#allocation4 + $0x3a0] ss:$16 sps:$4 sm:$0xff]  }
  0x70   :  { %763 = vmatpush2.bf16.msra.mxu1 %v3374_v16  ;;  %789 = vmatprep.subr.bf16.mxu0 %v3385_v19  ;;  %v3470_v16 = vld [vmem:[#allocation4 + $0x1a0] ss:$16 sps:$4 sm:$0xff]   ;;  %v3481_v19 = vld [vmem:[#allocation4 + $0x384] ss:$16 sps:$4 sm:$0xff]  }
  0x71   :  { %764 = vmatprep.subr.bf16.mxu1 %v3382_v18  ;;  %v3478_v18 = vld [vmem:[#allocation4 + $0x184] ss:$16 sps:$4 sm:$0xff]  }
  0x73   :  { %790 = vmatpush1.bf16.msra.mxu0 %v3383_v21  ;;  %v3479_v21 = vld [vmem:[#allocation4 + $0x380] ss:$16 sps:$4 sm:$0xff]  }
  0x74   :  { %765 = vmatpush2.bf16.msra.mxu1 %v3380_v20  ;;  %791 = vmatprep.subr.bf16.mxu0 %v3391_v23  ;;  %v3476_v20 = vld [vmem:[#allocation4 + $0x180] ss:$16 sps:$4 sm:$0xff]   ;;  %v3487_v23 = vld [vmem:[#allocation4 + $0x364] ss:$16 sps:$4 sm:$0xff]  }
  0x75   :  { %766 = vmatprep.subr.bf16.mxu1 %v3388_v22  ;;  %v3484_v22 = vld [vmem:[#allocation4 + $0x164] ss:$16 sps:$4 sm:$0xff]  }
  0x77   :  { %792 = vmatpush1.bf16.msra.mxu0 %v3389_v25  ;;  %v3485_v25 = vld [vmem:[#allocation4 + $0x360] ss:$16 sps:$4 sm:$0xff]  }
  0x78   :  { %767 = vmatpush2.bf16.msra.mxu1 %v3386_v24  ;;  %793 = vmatprep.subr.bf16.mxu0 %v3397_v27  ;;  %v3482_v24 = vld [vmem:[#allocation4 + $0x160] ss:$16 sps:$4 sm:$0xff]   ;;  %v3493_v27 = vld [vmem:[#allocation4 + $0x344] ss:$16 sps:$4 sm:$0xff]  }
  0x79   :  { %768 = vmatprep.subr.bf16.mxu1 %v3394_v26  ;;  %v3490_v26 = vld [vmem:[#allocation4 + $0x144] ss:$16 sps:$4 sm:$0xff]  }
  0x7b   :  { %794 = vmatpush1.bf16.msra.mxu0 %v3395_v28  ;;  %v3491_v28 = vld [vmem:[#allocation4 + $0x340] ss:$16 sps:$4 sm:$0xff]  }
  0x7c   :  { %769 = vmatpush2.bf16.msra.mxu1 %v3392_v0  ;;  %795 = vmatprep.subr.bf16.mxu0 %v3403_v30  ;;  %v3488_v0 = vld [vmem:[#allocation4 + $0x140] ss:$16 sps:$4 sm:$0xff]   ;;  %v3499_v30 = vld [vmem:[#allocation4 + $0x324] ss:$16 sps:$4 sm:$0xff]  }
  0x7d   :  { %770 = vmatprep.subr.bf16.mxu1 %v3400_v29  ;;  %v3496_v29 = vld [vmem:[#allocation4 + $0x124] ss:$16 sps:$4 sm:$0xff]  }
  0x7f   :  { %796 = vmatpush1.bf16.msra.mxu0 %v3401_v32  ;;  %v3497_v32 = vld [vmem:[#allocation4 + $0x320] ss:$16 sps:$4 sm:$0xff]  }
  0x80   :  { %771 = vmatpush2.bf16.msra.mxu1 %v3398_v31  ;;  %797 = vmatprep.subr.bf16.mxu0 %v3409_v34  ;;  %v3494_v31 = vld [vmem:[#allocation4 + $0x120] ss:$16 sps:$4 sm:$0xff]  }
  0x81   :  { %772 = vmatprep.subr.bf16.mxu1 %v3406_v33  ;;  %v3502_v33 = vld [vmem:[#allocation4 + $0x104] ss:$16 sps:$4 sm:$0xff]  }
  0x83   :  { %798 = vmatpush1.bf16.msra.mxu0 %v3407_v37 }
  0x84   :  { %773 = vmatpush2.bf16.msra.mxu1 %v3404_v36  ;;  %1797 = vmatprep.subr.bf16.mxu0 %v3412_v38  ;;  %v3505_v36 = vld [vmem:[#allocation4 + $0x304] ss:$16 sps:$4 sm:$0xff]   ;;  %v3500_v38 = vld [vmem:[#allocation4 + $0x100] ss:$16 sps:$4 sm:$0xff]  }
  0x85   :  { %1838 = vmatprep.subr.bf16.mxu1 %v3415_v39  ;;  %v3503_v39 = vld [vmem:[#allocation4 + $0x300] ss:$16 sps:$4 sm:$0xff]  }
  0x86   :  { %816 = vmatmul.mubr.bf16.vlgmr.msra.gmra.mxu0 %v3829_v35  ;;  %v3425_v35 = vld [vmem:[#allocation4 + $0x2a0] ss:$16 sps:$4 sm:$0xff]  }
  0x87   :  { %775 = vmatmul.mubr.bf16.vlgmr.msra.gmra.mxu1 %v3835_v7  ;;  %1798 = vmatpush1.bf16.msra.mxu0 %v3410_v40  ;;  %v3463_v7 = vld [vmem:[#allocation4 + $0x3e4] ss:$16 sps:$4 sm:$0xff]  }
  0x88   :  { %1839 = vmatpush1.bf16.msra.mxu1 %v3413_v41  ;;  %1799 = vmatprep.subr.bf16.mxu0 %v3418_v42  ;;  %v3508_v42 = vld [vmem:[#allocation4 + $0xec] ss:$16 sps:$4 sm:$0xff]  }
  0x89   :  { %1840 = vmatprep.subr.bf16.mxu1 %v3421_v43  ;;  %v3511_v43 = vld [vmem:[#allocation4 + $0x2ec] ss:$16 sps:$4 sm:$0xff]  }
  0x8b   :  { %1800 = vmatpush1.bf16.msra.mxu0 %v3416_v44 }
  0x8c   :  { %1841 = vmatpush1.bf16.msra.mxu1 %v3419_v45  ;;  %1801 = vmatprep.subr.bf16.mxu0 %v3424_v46 }
  0x8d   :  { %1842 = vmatprep.subr.bf16.mxu1 %v3427_v47 }
  0x8f   :  { %1802 = vmatpush1.bf16.msra.mxu0 %v3422_v48 }
  0x90   :  { %1843 = vmatpush1.bf16.msra.mxu1 %v3425_v35  ;;  %1803 = vmatprep.subr.bf16.mxu0 %v3430_v49 }
  0x91   :  { %1844 = vmatprep.subr.bf16.mxu1 %v3433_v50 }
  0x93   :  { %1804 = vmatpush1.bf16.msra.mxu0 %v3428_v51 }
  0x94   :  { %1845 = vmatpush1.bf16.msra.mxu1 %v3431_v52  ;;  %1805 = vmatprep.subr.bf16.mxu0 %v3436_v53 }
  0x95   :  { %1846 = vmatprep.subr.bf16.mxu1 %v3439_v54 }
  0x97   :  { %1806 = vmatpush1.bf16.msra.mxu0 %v3434_v55 }
  0x98   :  { %1847 = vmatpush1.bf16.msra.mxu1 %v3437_v56  ;;  %1807 = vmatprep.subr.bf16.mxu0 %v3442_v58 }
  0x99   :  { %1848 = vmatprep.subr.bf16.mxu1 %v3445_v60 }
  0x9b   :  { %1808 = vmatpush1.bf16.msra.mxu0 %v3440_v57 }
  0x9c   :  { %1849 = vmatpush1.bf16.msra.mxu1 %v3443_v59  ;;  %1809 = vmatprep.subr.bf16.mxu0 %v3448_v61 }
  0x9d   :  { %1850 = vmatprep.subr.bf16.mxu1 %v3451_v62 }
  0x9f   :  { %1810 = vmatpush1.bf16.msra.mxu0 %v3446_v63 }
  0xa0   :  { %1851 = vmatpush1.bf16.msra.mxu1 %v3449_v1  ;;  %1811 = vmatprep.subr.bf16.mxu0 %v3454_v2 }
  0xa1   :  { %1852 = vmatprep.subr.bf16.mxu1 %v3457_v3 }
  0xa3   :  { %1812 = vmatpush1.bf16.msra.mxu0 %v3452_v4 }
  0xa4   :  { %1853 = vmatpush1.bf16.msra.mxu1 %v3455_v5  ;;  %1813 = vmatprep.subr.bf16.mxu0 %v3460_v6 }
  0xa5   :  { %1854 = vmatprep.subr.bf16.mxu1 %v3463_v7 }
  0xa7   :  { %1814 = vmatpush2.bf16.msra.mxu0 %v3458_v8 }
  0xa8   :  { %1855 = vmatpush2.bf16.msra.mxu1 %v3461_v9  ;;  %1815 = vmatprep.subr.bf16.mxu0 %v3466_v10 }
  0xa9   :  { %1856 = vmatprep.subr.bf16.mxu1 %v3469_v11 }
  0xab   :  { %1816 = vmatpush2.bf16.msra.mxu0 %v3464_v12 }
  0xac   :  { %1857 = vmatpush2.bf16.msra.mxu1 %v3467_v13  ;;  %1817 = vmatprep.subr.bf16.mxu0 %v3472_v14 }
  0xad   :  { %1858 = vmatprep.subr.bf16.mxu1 %v3475_v15 }
  0xaf   :  { %1818 = vmatpush2.bf16.msra.mxu0 %v3470_v16 }
  0xb0   :  { %1859 = vmatpush2.bf16.msra.mxu1 %v3473_v17  ;;  %1819 = vmatprep.subr.bf16.mxu0 %v3478_v18 }
  0xb1   :  { %1860 = vmatprep.subr.bf16.mxu1 %v3481_v19 }
  0xb3   :  { %1820 = vmatpush2.bf16.msra.mxu0 %v3476_v20 }
  0xb4   :  { %1861 = vmatpush2.bf16.msra.mxu1 %v3479_v21  ;;  %1821 = vmatprep.subr.bf16.mxu0 %v3484_v22 }
  0xb5   :  { %1862 = vmatprep.subr.bf16.mxu1 %v3487_v23 }
  0xb7   :  { %1822 = vmatpush2.bf16.msra.mxu0 %v3482_v24 }
  0xb8   :  { %1863 = vmatpush2.bf16.msra.mxu1 %v3485_v25  ;;  %1823 = vmatprep.subr.bf16.mxu0 %v3490_v26 }
  0xb9   :  { %1864 = vmatprep.subr.bf16.mxu1 %v3493_v27 }
  0xbb   :  { %1824 = vmatpush2.bf16.msra.mxu0 %v3488_v0 }
  0xbc   :  { %1865 = vmatpush2.bf16.msra.mxu1 %v3491_v28  ;;  %1825 = vmatprep.subr.bf16.mxu0 %v3496_v29 }
  0xbd   :  { %1866 = vmatprep.subr.bf16.mxu1 %v3499_v30 }
  0xbf   :  { %1826 = vmatpush2.bf16.msra.mxu0 %v3494_v31 }
  0xc0   :  { %1867 = vmatpush2.bf16.msra.mxu1 %v3497_v32  ;;  %1827 = vmatprep.subr.bf16.mxu0 %v3502_v33 }
  0xc1   :  { %1868 = vmatprep.subr.bf16.mxu1 %v3505_v36 }
  0xc3   :  { %1828 = vmatpush2.bf16.msra.mxu0 %v3500_v38 }
  0xc4   :  { %1869 = vmatpush2.bf16.msra.mxu1 %v3503_v39  ;;  %1879 = vmatprep.subr.bf16.mxu0 %v3508_v42 }
  0xc5   :  { %1920 = vmatprep.subr.bf16.mxu1 %v3511_v43 }
 0x107   :  { %v735_v34 = vpop.f32.mrf.mxu1 }
 0x109   :  { %v737_v37 = vpop.f32.mrf.mxu1 }
 0x10b   :  { %v739_v40 = vpop.f32.mrf.mxu1 }
 0x10d   :  { %v740_v41 = vpop.f32.mrf.mxu1 }
 0x126   :  { %v694_v44 = vpop.f32.mrf.mxu0 }
 0x127   :  { %v3841_v45 = vadd.f32 %v735_v34, %v694_v44 }
 0x128   :  { %v696_v46 = vpop.f32.mrf.mxu0 }
 0x129   :  { %v826_v47 = vrot.slane %v3841_v45, 4  ;;  %v855_v48 = vmul.f32 %v3841_v45, %v3841_v45  ;;  %v3846_v35 = vadd.f32 %v737_v37, %v696_v46 }
 0x12a   :  { %v698_v49 = vpop.f32.mrf.mxu0 }
 0x12b   :  { %v827_v50 = vadd.f32 %v826_v47, %v3841_v45  ;;  %v859_v51 = vrot.slane %v855_v48, 4  ;;  %v832_v52 = vrot.slane %v3846_v35, 4  ;;  %v856_v53 = vmul.f32 %v3846_v35, %v3846_v35 }
 0x12c   :  { %v699_v54 = vpop.f32.mrf.mxu0 }
 0x12d   :  { %v828_v55 = vrot.slane %v827_v50, 2  ;;  %v860_v56 = vadd.f32 %v859_v51, %v855_v48  ;;  %v833_v57 = vadd.f32 %v832_v52, %v3846_v35  ;;  %v865_v58 = vrot.slane %v856_v53, 4 }
 0x12f   :  { %v829_v59 = vadd.f32 %v828_v55, %v827_v50  ;;  %v861_v60 = vrot.slane %v860_v56, 2  ;;  %v834_v61 = vrot.slane %v833_v57, 2  ;;  %v866_v62 = vadd.f32 %v865_v58, %v856_v53 }
 0x131   :  { %v830_v63 = vrot.slane %v829_v59, 1  ;;  %v862_v1 = vadd.f32 %v861_v60, %v860_v56  ;;  %v835_v2 = vadd.f32 %v834_v61, %v833_v57  ;;  %v867_v3 = vrot.slane %v866_v62, 2 }
 0x133   :  { %v831_v4 = vadd.f32 %v830_v63, %v829_v59  ;;  %v863_v5 = vrot.slane %v862_v1, 1  ;;  %v836_v6 = vrot.slane %v835_v2, 1  ;;  %v868_v7 = vadd.f32 %v867_v3, %v866_v62 }
 0x135   :  { %v3853_v8 = vmul.f32 0.125, %v831_v4  ;;  %v864_v9 = vadd.f32 %v863_v5, %v862_v1  ;;  %v837_v10 = vadd.f32 %v836_v6, %v835_v2  ;;  %v869_v11 = vrot.slane %v868_v7, 1 }
 0x137   :  { %v883_v12 = vmul.f32 0.125, %v864_v9  ;;  %v887_v13 = vmul.f32 %v3853_v8, %v3853_v8  ;;  %v870_v14 = vadd.f32 %v869_v11, %v868_v7  ;;  %v3857_v15 = vmul.f32 0.125, %v837_v10 }
 0x139   :  { %v891_v16 = vsub.f32 %v883_v12, %v887_v13  ;;  %v884_v17 = vmul.f32 0.125, %v870_v14  ;;  %v888_v18 = vmul.f32 %v3857_v15, %v3857_v15  ;;  %v3766_v14 = vmov 1966171168  }
 0x13b   :  { %v895_v19 = vmax.f32 %v891_v16, 0.0  ;;  %v892_v20 = vsub.f32 %v884_v17, %v888_v18  ;;  %v914_v16 = vunpack.c.l.s4 %v3766_v14  ;;  %v916_v17 = vlaneseq  ;;  %v3521_v14 = vld [vmem:[#allocation4 + $0x2a8] ss:$16 sps:$4 sm:$0xff]  }
 0x13d   :  { %v896_v21 = vmax.f32 %v892_v20, 0.0  ;;  %v899_v22 = vadd.f32 1e-05, %v895_v19  ;;  %v915_v18 = vunpack.c.0.s8 %v914_v16  ;;  %v917_v19 = vshrl.u32 %v916_v17, 7  ;;  %v3526_v16 = vld [vmem:[#allocation4 + $0x8c] ss:$16 sps:$4 sm:$0xff]  }
 0x13e   :  { %v3529_v17 = vld [vmem:[#allocation4 + $0x28c] ss:$16 sps:$4 sm:$0xff]  }
 0x13f   :  { %v900_v23 = vadd.f32 1e-05, %v896_v21  ;;  %v3873_v21 = vsub.s32 %v915_v18, %v917_v19  ;;  %v3524_v18 = vld [vmem:[#allocation4 + $0x88] ss:$16 sps:$4 sm:$0xff]  }
 0x141   :  { %3672 = vrsqrt.f32 %v900_v23 }
 0x142   :  { %3674 = vrsqrt.f32 %v899_v22 }
 0x146   :  { %v817_v25 = vpop.f32.mrf.mxu0 }
 0x147   :  { %v776_v24 = vpop.f32.mrf.mxu1 }
 0x148   :  { %v3861_v26 = vadd.f32 %v817_v25, %v776_v24  ;;  %v819_v0 = vpop.f32.mrf.mxu0 }
 0x149   :  { %v778_v27 = vpop.f32.mrf.mxu1 }
 0x14a   :  { %v838_v28 = vrot.slane %v3861_v26, 4  ;;  %v857_v29 = vmul.f32 %v3861_v26, %v3861_v26  ;;  %v3866_v30 = vadd.f32 %v819_v0, %v778_v27  ;;  %v821_v32 = vpop.f32.mrf.mxu0  ;;  %v824_v0 = vld [vmem:[%s4092_s7] sm:$0xf] }
 0x14b   :  { %v780_v31 = vpop.f32.mrf.mxu1  ;;  %v948_v32 = vsub.s32 2, %v917_v19 }
 0x14c   :  { %v839_v33 = vadd.f32 %v838_v28, %v3861_v26  ;;  %v871_v34 = vrot.slane %v857_v29, 4  ;;  %v844_v36 = vrot.slane %v3866_v30, 4  ;;  %v858_v37 = vmul.f32 %v3866_v30, %v3866_v30  ;;  %v822_v39 = vpop.f32.mrf.mxu0 }
 0x14d   :  { %v781_v38 = vpop.f32.mrf.mxu1  ;;  %v3880_v28 = vsub.s32 0, %v917_v19  ;;  %v3883_v31 = vsub.s32 1, %v917_v19 }
 0x14e   :  { %v840_v40 = vrot.slane %v839_v33, 2  ;;  %v872_v41 = vadd.f32 %v871_v34, %v857_v29  ;;  %v845_v42 = vadd.f32 %v844_v36, %v3866_v30  ;;  %v877_v43 = vrot.slane %v858_v37, 4  ;;  %v3673_v44 = vpop.eup %3672 }
 0x14f   :  { %v3675_v46 = vpop.eup %3674 }
 0x150   :  { %v841_v47 = vadd.f32 %v840_v40, %v839_v33  ;;  %v873_v48 = vrot.slane %v872_v41, 2  ;;  %v846_v49 = vrot.slane %v845_v42, 2  ;;  %v878_v50 = vadd.f32 %v877_v43, %v858_v37 }
 0x151   :  { %v911_v51 = vcombine.low %v3675_v46, %v3673_v44  ;;  %v952_v33 = vsub.s32 3, %v917_v19  ;;  %v3527_v19 = vld [vmem:[#allocation4 + $0x288] ss:$16 sps:$4 sm:$0xff]  }
 0x152   :  { %v842_v52 = vrot.slane %v841_v47, 1  ;;  %v874_v53 = vadd.f32 %v873_v48, %v872_v41  ;;  %v847_v54 = vadd.f32 %v846_v49, %v845_v42  ;;  %v879_v55 = vrot.slane %v878_v50, 2 }
 0x153   :  { %v919_v24 = vrot.slane %v911_v51, %v3873_v21 }
 0x154   :  { %v843_v56 = vadd.f32 %v842_v52, %v841_v47  ;;  %v875_v57 = vrot.slane %v874_v53, 1  ;;  %v848_v58 = vrot.slane %v847_v54, 1  ;;  %v880_v59 = vadd.f32 %v879_v55, %v878_v50  ;;  %v825_v52 = vld [vmem:[%s4092_s7 + $0x4] sm:$0xf] }
 0x156   :  { %v853_v60 = vmul.f32 0.125, %v843_v56  ;;  %v876_v61 = vadd.f32 %v875_v57, %v874_v53  ;;  %v849_v62 = vadd.f32 %v848_v58, %v847_v54  ;;  %v881_v63 = vrot.slane %v880_v59, 1 }
 0x158   :  { %v885_v1 = vmul.f32 0.125, %v876_v61  ;;  %v889_v2 = vmul.f32 %v853_v60, %v853_v60  ;;  %v854_v3 = vmul.f32 0.125, %v849_v62  ;;  %v882_v4 = vadd.f32 %v881_v63, %v880_v59 }
 0x15a   :  { %v893_v5 = vsub.f32 %v885_v1, %v889_v2  ;;  %v886_v6 = vmul.f32 0.125, %v882_v4  ;;  %v890_v7 = vmul.f32 %v854_v3, %v854_v3  ;;  %v3506_v4 = vld [vmem:[#allocation4 + $0xe8] ss:$16 sps:$4 sm:$0xff]  }
 0x15c   :  { %v897_v9 = vmax.f32 %v893_v5, 0.0  ;;  %v894_v10 = vsub.f32 %v886_v6, %v890_v7  ;;  %v3514_v6 = vld [vmem:[#allocation4 + $0xcc] ss:$16 sps:$4 sm:$0xff]  }
 0x15d   :  { %v3517_v7 = vld [vmem:[#allocation4 + $0x2cc] ss:$16 sps:$4 sm:$0xff]  }
 0x15e   :  { %v901_v11 = vadd.f32 1e-05, %v897_v9  ;;  %v898_v12 = vmax.f32 %v894_v10, 0.0  ;;  %v3512_v9 = vld [vmem:[#allocation4 + $0xc8] ss:$16 sps:$4 sm:$0xff]  }
 0x15f   :  { %v3515_v10 = vld [vmem:[#allocation4 + $0x2c8] ss:$16 sps:$4 sm:$0xff]  }
 0x160   :  { %v902_v13 = vadd.f32 1e-05, %v898_v12  ;;  %3676 = vrsqrt.f32 %v901_v11  ;;  %v3520_v11 = vld [vmem:[#allocation4 + $0xac] ss:$16 sps:$4 sm:$0xff]  }
 0x161   :  { %v3523_v12 = vld [vmem:[#allocation4 + $0x2ac] ss:$16 sps:$4 sm:$0xff]  }
 0x162   :  { %3678 = vrsqrt.f32 %v902_v13  ;;  %v3518_v13 = vld [vmem:[#allocation4 + $0xa8] ss:$16 sps:$4 sm:$0xff]  }
 0x16d   :  { %v3677_v20 = vpop.eup %3676 }
 0x16f   :  { %v3679_v22 = vpop.eup %3678 }
 0x170   :  { %v912_v23 = vcombine.low %v3677_v20, %v3679_v22  ;;  %v3532_v20 = vld [vmem:[#allocation4 + $0x6c] ss:$16 sps:$4 sm:$0xff]  }
 0x171   :  { %v3535_v22 = vld [vmem:[#allocation4 + $0x26c] ss:$16 sps:$4 sm:$0xff]  }
 0x172   :  { %v926_v25 = vrot.slane %v912_v23, %v3873_v21  ;;  %v3530_v23 = vld [vmem:[#allocation4 + $0x68] ss:$16 sps:$4 sm:$0xff]  }
 0x174   :  { %v927_v27 = vcombine.low %v919_v24, %v926_v25  ;;  %v3533_v24 = vld [vmem:[#allocation4 + $0x268] ss:$16 sps:$4 sm:$0xff]   ;;  %v3538_v25 = vld [vmem:[#allocation4 + $0x4c] ss:$16 sps:$4 sm:$0xff]  }
 0x176   :  { %v934_v29 = vrot.slane %v927_v27, %v3873_v21  ;;  %v3541_v27 = vld [vmem:[#allocation4 + $0x24c] ss:$16 sps:$4 sm:$0xff]  }
 0x178   :  { %v936_v34 = vmul.f32 %v934_v29, %v824_v0  ;;  %v3536_v0 = vld [vmem:[#allocation4 + $0x48] ss:$16 sps:$4 sm:$0xff]  }
 0x179   :  { %v3539_v29 = vld [vmem:[#allocation4 + $0x248] ss:$16 sps:$4 sm:$0xff]  }
 0x17a   :  { %v941_v36 = vrot.slane %v936_v34, %v3880_v28  ;;  %v945_v37 = vrot.slane %v936_v34, %v3883_v31  ;;  %v949_v38 = vrot.slane %v936_v34, %v948_v32  ;;  %v953_v39 = vrot.slane %v936_v34, %v952_v33  ;;  %v3542_v34 = vld [vmem:[#allocation4 + $0x28] ss:$16 sps:$4 sm:$0xff]  }
 0x17c   :  { %v958_v40 = vmul.f32 %v941_v36, %v3853_v8  ;;  %v959_v41 = vmul.f32 %v945_v37, %v3857_v15  ;;  %v960_v42 = vmul.f32 %v949_v38, %v853_v60  ;;  %v961_v43 = vmul.f32 %v953_v39, %v854_v3 }
 0x17d   :  { %v993_v44 = vmul.f32 %v945_v37, %v3846_v35  ;;  %v992_v46 = vmul.f32 %v941_v36, %v3841_v45  ;;  %v995_v53 = vmul.f32 %v953_v39, %v3866_v30  ;;  %v994_v35 = vmul.f32 %v949_v38, %v3861_v26  ;;  %v3509_v30 = vld [vmem:[#allocation4 + $0x2e8] ss:$16 sps:$4 sm:$0xff]   ;;  %v3550_v37 = vld [vmem:[#allocation4 + $0xc] ss:$16 sps:$4 sm:$0xff]  }
 0x17e   :  { %v966_v47 = vcombine.low %v958_v40, %v959_v41  ;;  %v967_v48 = vcombine.low %v960_v42, %v961_v43  ;;  %v3545_v36 = vld [vmem:[#allocation4 + $0x228] ss:$16 sps:$4 sm:$0xff]   ;;  %v3553_v38 = vld [vmem:[#allocation4 + $0x20c] ss:$16 sps:$4 sm:$0xff]  }
 0x17f   :  { %v3548_v39 = vld [vmem:[#allocation4 + $0x8] ss:$16 sps:$4 sm:$0xff]   ;;  %v3556_v41 = vld [vmem:[#allocation4 + $0x1ec] ss:$16 sps:$4 sm:$0xff]  }
 0x180   :  { %v974_v49 = vrot.slane %v966_v47, %v3873_v21  ;;  %v981_v50 = vrot.slane %v967_v48, %v3873_v21  ;;  %v3551_v40 = vld [vmem:[#allocation4 + $0x208] ss:$16 sps:$4 sm:$0xff]   ;;  %v3559_v42 = vld [vmem:[#allocation4 + $0x3ec] ss:$16 sps:$4 sm:$0xff]  }
 0x181   :  { %v3554_v43 = vld [vmem:[#allocation4 + $0x1e8] ss:$16 sps:$4 sm:$0xff]   ;;  %v3565_v47 = vld [vmem:[#allocation4 + $0x3cc] ss:$16 sps:$4 sm:$0xff]  }
 0x182   :  { %v982_v51 = vcombine.low %v974_v49, %v981_v50  ;;  %v3560_v48 = vld [vmem:[#allocation4 + $0x1c8] ss:$16 sps:$4 sm:$0xff]   ;;  %v3568_v50 = vld [vmem:[#allocation4 + $0x1ac] ss:$16 sps:$4 sm:$0xff]  }
 0x183   :  { %v3563_v49 = vld [vmem:[#allocation4 + $0x3c8] ss:$16 sps:$4 sm:$0xff]  }
 0x184   :  { %v989_v8 = vrot.slane %v982_v51, %v3873_v21  ;;  %v3571_v51 = vld [vmem:[#allocation4 + $0x3ac] ss:$16 sps:$4 sm:$0xff]  }
 0x186   :  { %v991_v15 = vsub.f32 %v825_v52, %v989_v8  ;;  %v3566_v52 = vld [vmem:[#allocation4 + $0x1a8] ss:$16 sps:$4 sm:$0xff]  }
 0x187   :  { %v3569_v8 = vld [vmem:[#allocation4 + $0x3a8] ss:$16 sps:$4 sm:$0xff]  }
 0x188   :  { %v1004_v45 = vrot.slane %v991_v15, %v3883_v31  ;;  %v1012_v54 = vrot.slane %v991_v15, %v952_v33  ;;  %v1000_v55 = vrot.slane %v991_v15, %v3880_v28  ;;  %v1008_v56 = vrot.slane %v991_v15, %v948_v32  ;;  %v3544_v32 = vld [vmem:[#allocation4 + $0x2c] ss:$16 sps:$4 sm:$0xff]  }
 0x189   :  { %v3547_v33 = vld [vmem:[#allocation4 + $0x22c] ss:$16 sps:$4 sm:$0xff]  }
 0x18a   :  { %v1018_v57 = vadd.f32 %v1004_v45, %v993_v44  ;;  %v1020_v58 = vadd.f32 %v1012_v54, %v995_v53  ;;  %v1017_v59 = vadd.f32 %v1000_v55, %v992_v46  ;;  %v1019_v60 = vadd.f32 %v1008_v56, %v994_v35  ;;  %v3557_v44 = vld [vmem:[#allocation4 + $0x3e8] ss:$16 sps:$4 sm:$0xff]   ;;  %v3562_v46 = vld [vmem:[#allocation4 + $0x1cc] ss:$16 sps:$4 sm:$0xff]  }
 0x18b   :  { %v3574_v15 = vld [vmem:[#allocation4 + $0x18c] ss:$16 sps:$4 sm:$0xff]   ;;  %v3572_v35 = vld [vmem:[#allocation4 + $0x188] ss:$16 sps:$4 sm:$0xff]  }
 0x18c   :  { %v1022_v61 = vmax.f32 %v1018_v57, 0.0  ;;  %v1024_v62 = vmax.f32 %v1020_v58, 0.0  ;;  %v1021_v63 = vmax.f32 %v1017_v59, 0.0  ;;  %v1023_v1 = vmax.f32 %v1019_v60, 0.0  ;;  %v3577_v53 = vld [vmem:[#allocation4 + $0x38c] ss:$16 sps:$4 sm:$0xff]  }
 0x18d   :  { %v3575_v45 = vld [vmem:[#allocation4 + $0x388] ss:$16 sps:$4 sm:$0xff]   ;;  %v3580_v54 = vld [vmem:[#allocation4 + $0x16c] ss:$16 sps:$4 sm:$0xff]  }
 0x18e   :  { %v1026_v2 = vpack.c.bf16 %v1022_v61, %v1022_v61  ;;  %v1028_v3 = vpack.c.bf16 %v1024_v62, %v1024_v62  ;;  %v3901_v5 = vpack.c.bf16 %v1021_v63, %v1021_v63  ;;  %v3903_v26 = vpack.c.bf16 %v1023_v1, %v1023_v1  ;;  %v3583_v55 = vld [vmem:[#allocation4 + $0x36c] ss:$16 sps:$4 sm:$0xff]   ;;  %v3578_v56 = vld [vmem:[#allocation4 + $0x168] ss:$16 sps:$4 sm:$0xff]  }
 0x18f   :  { %v3581_v57 = vld [vmem:[#allocation4 + $0x368] ss:$16 sps:$4 sm:$0xff]   ;;  %v3586_v58 = vld [vmem:[#allocation4 + $0x14c] ss:$16 sps:$4 sm:$0xff]  }
 0x190   :  { %1829 = vmatprep.mubr.bf16.mxu0 %v1026_v2  ;;  %1870 = vmatprep.mubr.bf16.mxu1 %v1028_v3  ;;  %v3589_v59 = vld [vmem:[#allocation4 + $0x34c] ss:$16 sps:$4 sm:$0xff]   ;;  %v3584_v60 = vld [vmem:[#allocation4 + $0x148] ss:$16 sps:$4 sm:$0xff]  }
 0x191   :  { %1830 = vmatmul.mubr.bf16.vlgmr.msra.gmra.mxu0 %v3901_v5  ;;  %1871 = vmatmul.mubr.bf16.vlgmr.msra.gmra.mxu1 %v3903_v26  ;;  %v3587_v61 = vld [vmem:[#allocation4 + $0x348] ss:$16 sps:$4 sm:$0xff]   ;;  %v3592_v62 = vld [vmem:[#allocation4 + $0x12c] ss:$16 sps:$4 sm:$0xff]  }
 0x192   :  { %1880 = vmatpush1.bf16.msra.mxu0 %v3506_v4  ;;  %1921 = vmatpush1.bf16.msra.mxu1 %v3509_v30  ;;  %v3595_v63 = vld [vmem:[#allocation4 + $0x32c] ss:$16 sps:$4 sm:$0xff]   ;;  %v3590_v1 = vld [vmem:[#allocation4 + $0x128] ss:$16 sps:$4 sm:$0xff]  }
 0x193   :  { %1911 = vmatprep.mubr.bf16.mxu0 %v1026_v2  ;;  %1952 = vmatprep.mubr.bf16.mxu1 %v1028_v3  ;;  %v3593_v2 = vld [vmem:[#allocation4 + $0x328] ss:$16 sps:$4 sm:$0xff]   ;;  %v3598_v3 = vld [vmem:[#allocation4 + $0x10c] ss:$16 sps:$4 sm:$0xff]  }
 0x194   :  { %1881 = vmatprep.subr.bf16.mxu0 %v3514_v6  ;;  %1922 = vmatprep.subr.bf16.mxu1 %v3517_v7  ;;  %v3601_v4 = vld [vmem:[#allocation4 + $0x30c] ss:$16 sps:$4 sm:$0xff]   ;;  %v3596_v30 = vld [vmem:[#allocation4 + $0x108] ss:$16 sps:$4 sm:$0xff]  }
 0x195   :  { %v3599_v6 = vld [vmem:[#allocation4 + $0x308] ss:$16 sps:$4 sm:$0xff]   ;;  %v3604_v7 = vld [vmem:[#allocation6 + $0x74] ss:$8 sps:$4 sm:$0xff]  }
 0x196   :  { %1882 = vmatpush1.bf16.msra.mxu0 %v3512_v9  ;;  %1923 = vmatpush1.bf16.msra.mxu1 %v3515_v10  ;;  %v3602_v9 = vld [vmem:[#allocation6 + $0x70] ss:$8 sps:$4 sm:$0xff]   ;;  %v3607_v10 = vld [vmem:[#allocation6 + $0x64] ss:$8 sps:$4 sm:$0xff]  }
 0x197   :  { %1883 = vmatprep.subr.bf16.mxu0 %v3520_v11  ;;  %1924 = vmatprep.subr.bf16.mxu1 %v3523_v12  ;;  %v3605_v11 = vld [vmem:[#allocation6 + $0x60] ss:$8 sps:$4 sm:$0xff]   ;;  %v3610_v12 = vld [vmem:[#allocation6 + $0x54] ss:$8 sps:$4 sm:$0xff]  }
 0x19a   :  { %1884 = vmatpush1.bf16.msra.mxu0 %v3518_v13  ;;  %1925 = vmatpush1.bf16.msra.mxu1 %v3521_v14  ;;  %v3608_v13 = vld [vmem:[#allocation6 + $0x50] ss:$8 sps:$4 sm:$0xff]   ;;  %v3613_v14 = vld [vmem:[#allocation6 + $0x44] ss:$8 sps:$4 sm:$0xff]  }
 0x19b   :  { %1885 = vmatprep.subr.bf16.mxu0 %v3526_v16  ;;  %1926 = vmatprep.subr.bf16.mxu1 %v3529_v17  ;;  %v3611_v16 = vld [vmem:[#allocation6 + $0x40] ss:$8 sps:$4 sm:$0xff]   ;;  %v3616_v17 = vld [vmem:[#allocation6 + $0x34] ss:$8 sps:$4 sm:$0xff]  }
 0x19e   :  { %1886 = vmatpush1.bf16.msra.mxu0 %v3524_v18  ;;  %1927 = vmatpush1.bf16.msra.mxu1 %v3527_v19  ;;  %v3619_v18 = vld [vmem:[#allocation6 + $0x24] ss:$8 sps:$4 sm:$0xff]   ;;  %v3622_v19 = vld [vmem:[#allocation6 + $0x14] ss:$8 sps:$4 sm:$0xff]  }
 0x19f   :  { %1887 = vmatprep.subr.bf16.mxu0 %v3532_v20  ;;  %1928 = vmatprep.subr.bf16.mxu1 %v3535_v22  ;;  %v3620_v20 = vld [vmem:[#allocation6 + $0x10] ss:$8 sps:$4 sm:$0xff]   ;;  %v3625_v22 = vld [vmem:[#allocation6 + $0x4] ss:$8 sps:$4 sm:$0xff]  }
 0x1a2   :  { %1888 = vmatpush1.bf16.msra.mxu0 %v3530_v23  ;;  %1929 = vmatpush1.bf16.msra.mxu1 %v3533_v24  ;;  %v3623_v23 = vld [vmem:[#allocation6] ss:$8 sps:$4 sm:$0xff]   ;;  %v3628_v24 = vld [vmem:[#allocation6 + $0xf4] ss:$8 sps:$4 sm:$0xff]  }
 0x1a3   :  { %1889 = vmatprep.subr.bf16.mxu0 %v3538_v25  ;;  %1930 = vmatprep.subr.bf16.mxu1 %v3541_v27  ;;  %v3626_v25 = vld [vmem:[#allocation6 + $0xf0] ss:$8 sps:$4 sm:$0xff]   ;;  %v3631_v27 = vld [vmem:[#allocation6 + $0xe4] ss:$8 sps:$4 sm:$0xff]  }
 0x1a6   :  { %1890 = vmatpush1.bf16.msra.mxu0 %v3536_v0  ;;  %1931 = vmatpush1.bf16.msra.mxu1 %v3539_v29  ;;  %v3629_v0 = vld [vmem:[#allocation6 + $0xe0] ss:$8 sps:$4 sm:$0xff]   ;;  %v3634_v29 = vld [vmem:[#allocation6 + $0xd4] ss:$8 sps:$4 sm:$0xff]  }
 0x1a7   :  { %1891 = vmatprep.subr.bf16.mxu0 %v3544_v32  ;;  %1932 = vmatprep.subr.bf16.mxu1 %v3547_v33  ;;  %v3632_v32 = vld [vmem:[#allocation6 + $0xd0] ss:$8 sps:$4 sm:$0xff]   ;;  %v3637_v33 = vld [vmem:[#allocation6 + $0xc4] ss:$8 sps:$4 sm:$0xff]  }
 0x1aa   :  { %1892 = vmatpush1.bf16.msra.mxu0 %v3542_v34  ;;  %1933 = vmatpush1.bf16.msra.mxu1 %v3545_v36  ;;  %v3635_v34 = vld [vmem:[#allocation6 + $0xc0] ss:$8 sps:$4 sm:$0xff]   ;;  %v3640_v36 = vld [vmem:[#allocation6 + $0xb4] ss:$8 sps:$4 sm:$0xff]  }
 0x1ab   :  { %1893 = vmatprep.subr.bf16.mxu0 %v3550_v37  ;;  %1934 = vmatprep.subr.bf16.mxu1 %v3553_v38  ;;  %v3638_v37 = vld [vmem:[#allocation6 + $0xb0] ss:$8 sps:$4 sm:$0xff]   ;;  %v3643_v38 = vld [vmem:[#allocation6 + $0xa4] ss:$8 sps:$4 sm:$0xff]  }
 0x1ae   :  { %1894 = vmatpush1.bf16.msra.mxu0 %v3548_v39  ;;  %1935 = vmatpush1.bf16.msra.mxu1 %v3551_v40  ;;  %v3641_v39 = vld [vmem:[#allocation6 + $0xa0] ss:$8 sps:$4 sm:$0xff]   ;;  %v3646_v40 = vld [vmem:[#allocation6 + $0x94] ss:$8 sps:$4 sm:$0xff]  }
 0x1af   :  { %1895 = vmatprep.subr.bf16.mxu0 %v3556_v41  ;;  %1936 = vmatprep.subr.bf16.mxu1 %v3559_v42  ;;  %v3644_v41 = vld [vmem:[#allocation6 + $0x90] ss:$8 sps:$4 sm:$0xff]   ;;  %v3649_v42 = vld [vmem:[#allocation6 + $0x84] ss:$8 sps:$4 sm:$0xff]  }
 0x1b2   :  { %1896 = vmatpush2.bf16.msra.mxu0 %v3554_v43  ;;  %1937 = vmatpush2.bf16.msra.mxu1 %v3557_v44  ;;  %v3647_v43 = vld [vmem:[#allocation6 + $0x80] ss:$8 sps:$4 sm:$0xff]  }
 0x1b3   :  { %1897 = vmatprep.subr.bf16.mxu0 %v3562_v46  ;;  %1938 = vmatprep.subr.bf16.mxu1 %v3565_v47 }
 0x1b6   :  { %1898 = vmatpush2.bf16.msra.mxu0 %v3560_v48  ;;  %1939 = vmatpush2.bf16.msra.mxu1 %v3563_v49 }
 0x1b7   :  { %1899 = vmatprep.subr.bf16.mxu0 %v3568_v50  ;;  %1940 = vmatprep.subr.bf16.mxu1 %v3571_v51 }
 0x1ba   :  { %1900 = vmatpush2.bf16.msra.mxu0 %v3566_v52  ;;  %1941 = vmatpush2.bf16.msra.mxu1 %v3569_v8 }
 0x1bb   :  { %1901 = vmatprep.subr.bf16.mxu0 %v3574_v15  ;;  %1942 = vmatprep.subr.bf16.mxu1 %v3577_v53 }
 0x1be   :  { %1902 = vmatpush2.bf16.msra.mxu0 %v3572_v35  ;;  %1943 = vmatpush2.bf16.msra.mxu1 %v3575_v45 }
 0x1bf   :  { %1903 = vmatprep.subr.bf16.mxu0 %v3580_v54  ;;  %1944 = vmatprep.subr.bf16.mxu1 %v3583_v55 }
 0x1c2   :  { %1904 = vmatpush2.bf16.msra.mxu0 %v3578_v56  ;;  %1945 = vmatpush2.bf16.msra.mxu1 %v3581_v57 }
 0x1c3   :  { %1905 = vmatprep.subr.bf16.mxu0 %v3586_v58  ;;  %1946 = vmatprep.subr.bf16.mxu1 %v3589_v59 }
 0x1c6   :  { %1906 = vmatpush2.bf16.msra.mxu0 %v3584_v60  ;;  %1947 = vmatpush2.bf16.msra.mxu1 %v3587_v61 }
 0x1c7   :  { %1907 = vmatprep.subr.bf16.mxu0 %v3592_v62  ;;  %1948 = vmatprep.subr.bf16.mxu1 %v3595_v63 }
 0x1ca   :  { %1908 = vmatpush2.bf16.msra.mxu0 %v3590_v1  ;;  %1949 = vmatpush2.bf16.msra.mxu1 %v3593_v2 }
 0x1cb   :  { %1909 = vmatprep.subr.bf16.mxu0 %v3598_v3  ;;  %1950 = vmatprep.subr.bf16.mxu1 %v3601_v4 }
 0x1ce   :  { %1910 = vmatpush2.bf16.msra.mxu0 %v3596_v30  ;;  %1951 = vmatpush2.bf16.msra.mxu1 %v3599_v6 }
 0x1cf   :  { %2265 = vmatprep.subr.bf16.mxu0 %v3604_v7 }
 0x1d1   :  { %1912 = vmatmul.mubr.bf16.vlgmr.msra.gmra.mxu0 %v3901_v5  ;;  %1953 = vmatmul.mubr.bf16.vlgmr.msra.gmra.mxu1 %v3903_v26  ;;  %v3614_v5 = vld [vmem:[#allocation6 + $0x30] ss:$8 sps:$4 sm:$0xff]   ;;  %v3617_v26 = vld [vmem:[#allocation6 + $0x20] ss:$8 sps:$4 sm:$0xff]  }
 0x1d2   :  { %2266 = vmatpush1.bf16.msra.mxu0 %v3602_v9 }
 0x1d3   :  { %2267 = vmatprep.subr.bf16.mxu0 %v3607_v10 }
 0x1d6   :  { %2268 = vmatpush1.bf16.msra.mxu0 %v3605_v11 }
 0x1d7   :  { %2269 = vmatprep.subr.bf16.mxu0 %v3610_v12 }
 0x1da   :  { %2270 = vmatpush1.bf16.msra.mxu0 %v3608_v13 }
 0x1db   :  { %2271 = vmatprep.subr.bf16.mxu0 %v3613_v14 }
 0x1de   :  { %2272 = vmatpush1.bf16.msra.mxu0 %v3611_v16 }
 0x1df   :  { %2273 = vmatprep.subr.bf16.mxu0 %v3616_v17 }
 0x1e2   :  { %2274 = vmatpush1.bf16.msra.mxu0 %v3614_v5 }
 0x1e3   :  { %2275 = vmatprep.subr.bf16.mxu0 %v3619_v18 }
 0x1e6   :  { %2276 = vmatpush1.bf16.msra.mxu0 %v3617_v26 }
 0x1e7   :  { %2277 = vmatprep.subr.bf16.mxu0 %v3622_v19 }
 0x1ea   :  { %2278 = vmatpush1.bf16.msra.mxu0 %v3620_v20 }
 0x1eb   :  { %2279 = vmatprep.subr.bf16.mxu0 %v3625_v22 }
 0x1ee   :  { %2280 = vmatpush1.bf16.msra.mxu0 %v3623_v23 }
 0x1ef   :  { %2281 = vmatprep.subr.bf16.mxu0 %v3628_v24 }
 0x1f2   :  { %2282 = vmatpush2.bf16.msra.mxu0 %v3626_v25 }
 0x1f3   :  { %2283 = vmatprep.subr.bf16.mxu0 %v3631_v27 }
 0x1f6   :  { %2284 = vmatpush2.bf16.msra.mxu0 %v3629_v0 }
 0x1f7   :  { %2285 = vmatprep.subr.bf16.mxu0 %v3634_v29 }
 0x1fa   :  { %2286 = vmatpush2.bf16.msra.mxu0 %v3632_v32 }
 0x1fb   :  { %2287 = vmatprep.subr.bf16.mxu0 %v3637_v33 }
 0x1fe   :  { %2288 = vmatpush2.bf16.msra.mxu0 %v3635_v34  ;;  %v1961_v34 = vld [vmem:[%s4092_s7 + $0x8] sm:$0x3] }
 0x1ff   :  { %2289 = vmatprep.subr.bf16.mxu0 %v3640_v36 }
 0x202   :  { %2290 = vmatpush2.bf16.msra.mxu0 %v3638_v37 }
 0x203   :  { %2291 = vmatprep.subr.bf16.mxu0 %v3643_v38 }
 0x206   :  { %2292 = vmatpush2.bf16.msra.mxu0 %v3641_v39 }
 0x207   :  { %2293 = vmatprep.subr.bf16.mxu0 %v3646_v40 }
 0x20a   :  { %2294 = vmatpush2.bf16.msra.mxu0 %v3644_v41 }
 0x20b   :  { %2295 = vmatprep.subr.bf16.mxu0 %v3649_v42 }
 0x20e   :  { %2296 = vmatpush2.bf16.msra.mxu0 %v3647_v43 }
 0x251   :  { %v1831_v44 = vpop.f32.mrf.mxu0  ;;  %v1872_v46 = vpop.f32.mrf.mxu1 }
 0x252   :  { %v3909_v47 = vadd.f32 %v1872_v46, %v1831_v44  ;;  %v1962_v44 = vld [vmem:[%s4092_s7 + $0xa] sm:$0x3] }
 0x253   :  { %v1833_v48 = vpop.f32.mrf.mxu0  ;;  %v1874_v49 = vpop.f32.mrf.mxu1 }
 0x254   :  { %v1963_v50 = vrot.slane %v3909_v47, 4  ;;  %v1977_v51 = vmul.f32 %v3909_v47, %v3909_v47  ;;  %v1875_v52 = vadd.f32 %v1874_v49, %v1833_v48 }
 0x255   :  { %v1835_v8 = vpop.f32.mrf.mxu0  ;;  %v1876_v15 = vpop.f32.mrf.mxu1 }
 0x256   :  { %v1964_v53 = vadd.f32 %v1963_v50, %v3909_v47  ;;  %v1979_v35 = vrot.slane %v1977_v51, 4  ;;  %v1969_v45 = vrot.slane %v1875_v52, 4  ;;  %v1978_v54 = vmul.f32 %v1875_v52, %v1875_v52 }
 0x257   :  { %v1836_v55 = vpop.f32.mrf.mxu0  ;;  %v1877_v56 = vpop.f32.mrf.mxu1 }
 0x258   :  { %v1965_v57 = vrot.slane %v1964_v53, 2  ;;  %v1980_v58 = vadd.f32 %v1979_v35, %v1977_v51  ;;  %v1970_v59 = vadd.f32 %v1969_v45, %v1875_v52  ;;  %v1985_v60 = vrot.slane %v1978_v54, 4 }
 0x25a   :  { %v1966_v61 = vadd.f32 %v1965_v57, %v1964_v53  ;;  %v1981_v62 = vrot.slane %v1980_v58, 2  ;;  %v1971_v63 = vrot.slane %v1970_v59, 2  ;;  %v1986_v1 = vadd.f32 %v1985_v60, %v1978_v54 }
 0x25c   :  { %v1967_v2 = vrot.slane %v1966_v61, 1  ;;  %v1982_v3 = vadd.f32 %v1981_v62, %v1980_v58  ;;  %v1972_v4 = vadd.f32 %v1971_v63, %v1970_v59  ;;  %v1987_v30 = vrot.slane %v1986_v1, 2 }
 0x25e   :  { %v1968_v6 = vadd.f32 %v1967_v2, %v1966_v61  ;;  %v1983_v7 = vrot.slane %v1982_v3, 1  ;;  %v1973_v9 = vrot.slane %v1972_v4, 1  ;;  %v1988_v10 = vadd.f32 %v1987_v30, %v1986_v1  ;;  %v3650_v1 = vld [vmem:[%s4089_s4 + $0x78] sm:$0xff]   ;;  %v3654_v30 = vld [vmem:[%s4089_s4 + $0x68] sm:$0xff]  }
 0x25f   :  { %v3651_v2 = vld [vmem:[%s4089_s4 + $0x38] sm:$0xff]   ;;  %3200 = vmatprep.subr.bf16.mxu1 %v3650_v1 }
 0x260   :  { %v1975_v11 = vmul.f32 0.125, %v1968_v6  ;;  %v1984_v12 = vadd.f32 %v1983_v7, %v1982_v3  ;;  %v1974_v13 = vadd.f32 %v1973_v9, %v1972_v4  ;;  %v1989_v14 = vrot.slane %v1988_v10, 1  ;;  %3201 = vmatpush3.bf16.msra.mxu1 %v3651_v2  ;;  %v3652_v3 = vld [vmem:[%s4089_s4 + $0x70] sm:$0xff]   ;;  %v3655_v6 = vld [vmem:[%s4089_s4 + $0x28] sm:$0xff]   ;;  %v3656_v7 = vld [vmem:[%s4089_s4 + $0x60] sm:$0xff]  }
 0x261   :  { %v3653_v4 = vld [vmem:[%s4089_s4 + $0x30] sm:$0xff]   ;;  %3202 = vmatprep.subr.bf16.mxu1 %v3652_v3  ;;  %v3657_v9 = vld [vmem:[%s4089_s4 + $0x20] sm:$0xff]  }
 0x262   :  { %v1991_v16 = vmul.f32 0.125, %v1984_v12  ;;  %v1993_v17 = vmul.f32 %v1975_v11, %v1975_v11  ;;  %v1990_v5 = vadd.f32 %v1989_v14, %v1988_v10  ;;  %v1976_v26 = vmul.f32 0.125, %v1974_v13  ;;  %v3658_v10 = vld [vmem:[%s4089_s4 + $0x58] sm:$0xff]   ;;  %v3660_v12 = vld [vmem:[%s4089_s4 + $0x50] sm:$0xff]   ;;  %v3662_v14 = vld [vmem:[%s4089_s4 + $0x48] sm:$0xff]  }
 0x263   :  { %v3661_v13 = vld [vmem:[%s4089_s4 + $0x10] sm:$0xff]  }
 0x264   :  { %v1995_v18 = vsub.f32 %v1991_v16, %v1993_v17  ;;  %v1992_v19 = vmul.f32 0.125, %v1990_v5  ;;  %v1994_v20 = vmul.f32 %v1976_v26, %v1976_v26  ;;  %3203 = vmatpush3.bf16.msra.mxu1 %v3653_v4  ;;  %v3663_v16 = vld [vmem:[%s4089_s4 + $0x8] sm:$0xff]   ;;  %v3664_v17 = vld [vmem:[%s4089_s4 + $0x40] sm:$0xff]  }
 0x265   :  { %3204 = vmatprep.subr.bf16.mxu1 %v3654_v30  ;;  %v3665_v5 = vld [vmem:[%s4089_s4] sm:$0xff]   ;;  %v2306_v4 = vld [vmem:[%s4092_s7 + $0xc] sm:$0x3] }
 0x266   :  { %v1997_v22 = vmax.f32 %v1995_v18, 0.0  ;;  %v1996_v23 = vsub.f32 %v1992_v19, %v1994_v20 }
 0x268   :  { %v1999_v24 = vadd.f32 1e-05, %v1997_v22  ;;  %v1998_v25 = vmax.f32 %v1996_v23, 0.0  ;;  %3205 = vmatpush3.bf16.msra.mxu1 %v3655_v6 }
 0x269   :  { %3206 = vmatprep.subr.bf16.mxu1 %v3656_v7 }
 0x26a   :  { %v2000_v27 = vadd.f32 1e-05, %v1998_v25  ;;  %3680 = vrsqrt.f32 %v1999_v24 }
 0x26c   :  { %3682 = vrsqrt.f32 %v2000_v27  ;;  %3207 = vmatpush3.bf16.msra.mxu1 %v3657_v9 }
 0x26d   :  { %3208 = vmatprep.subr.bf16.mxu1 %v3658_v10 }
 0x277   :  { %v3681_v0 = vpop.eup %3680 }
 0x279   :  { %v3683_v29 = vpop.eup %3682 }
 0x27a   :  { %v2005_v32 = vcombine.low %v3681_v0, %v3683_v29 }
 0x27c   :  { %v2012_v33 = vrot.slane %v2005_v32, %v3873_v21 }
 0x27e   :  { %v2019_v36 = vrot.slane %v2012_v33, %v3873_v21 }
 0x280   :  { %v2021_v37 = vmul.f32 %v2019_v36, %v1961_v34 }
 0x282   :  { %v2026_v38 = vrot.slane %v2021_v37, %v3880_v28  ;;  %v2030_v39 = vrot.slane %v2021_v37, %v3883_v31 }
 0x284   :  { %v2033_v40 = vmul.f32 %v2026_v38, %v1975_v11  ;;  %v2034_v41 = vmul.f32 %v2030_v39, %v1976_v26  ;;  %v2055_v49 = vmul.f32 %v2030_v39, %v1875_v52  ;;  %v2054_v51 = vmul.f32 %v2026_v38, %v3909_v47  ;;  %v3659_v11 = vld [vmem:[%s4089_s4 + $0x18] sm:$0xff]  }
 0x285   :  { %3209 = vmatpush3.bf16.msra.mxu1 %v3659_v11 }
 0x286   :  { %v2037_v42 = vcombine.low %v2033_v40, %v2034_v41  ;;  %3210 = vmatprep.subr.bf16.mxu1 %v3660_v12 }
 0x288   :  { %v2044_v43 = vrot.slane %v2037_v42, %v3873_v21 }
 0x289   :  { %3211 = vmatpush3.bf16.msra.mxu1 %v3661_v13 }
 0x28a   :  { %v2051_v46 = vrot.slane %v2044_v43, %v3873_v21  ;;  %3212 = vmatprep.subr.bf16.mxu1 %v3662_v14  ;;  %v2414_v14 = vld [vmem:[%s4092_s7 + $0x10] sm:$0x3] }
 0x28c   :  { %v2053_v48 = vsub.f32 %v1962_v44, %v2051_v46 }
 0x28d   :  { %3213 = vmatpush3.bf16.msra.mxu1 %v3663_v16  ;;  %v2307_v16 = vld [vmem:[%s4092_s7 + $0xe] sm:$0x3] }
 0x28e   :  { %v2064_v50 = vrot.slane %v2053_v48, %v3883_v31  ;;  %v2060_v8 = vrot.slane %v2053_v48, %v3880_v28  ;;  %3214 = vmatprep.subr.bf16.mxu1 %v3664_v17 }
 0x290   :  { %v2068_v15 = vadd.f32 %v2064_v50, %v2055_v49  ;;  %v2067_v53 = vadd.f32 %v2060_v8, %v2054_v51 }
 0x291   :  { %v1913_v35 = vpop.f32.mrf.mxu0  ;;  %v1954_v45 = vpop.f32.mrf.mxu1  ;;  %3215 = vmatpush3.bf16.msra.mxu1 %v3665_v5  ;;  %v2419_v5 = vrot.slane %v2414_v14, %v3880_v28 }
 0x292   :  { %v3930_v54 = vadd.f32 %v1954_v45, %v1913_v35  ;;  %v2070_v55 = vmax.f32 %v2068_v15, 0.0  ;;  %v2069_v56 = vmax.f32 %v2067_v53, 0.0 }
 0x293   :  { %v1915_v57 = vpop.f32.mrf.mxu0  ;;  %v1956_v58 = vpop.f32.mrf.mxu1 }
 0x294   :  { %v3932_v59 = vadd.f32 %v1956_v58, %v1915_v57  ;;  %v2072_v60 = vpack.c.bf16 %v2070_v55, %v2070_v55  ;;  %v2071_v52 = vpack.c.bf16 %v2069_v56, %v2069_v56 }
 0x295   :  { %v1917_v61 = vpop.f32.mrf.mxu0  ;;  %v1958_v62 = vpop.f32.mrf.mxu1 }
 0x296   :  { %2297 = vmatprep.mubr.bf16.mxu0 %v2072_v60 }
 0x297   :  { %v1918_v47 = vpop.f32.mrf.mxu0  ;;  %v1959_v63 = vpop.f32.mrf.mxu1  ;;  %2298 = vmatmul.mubr.bf16.vlgmr.msra.gmra.mxu0 %v2071_v52 }
 0x357   :  { %v3982_v26 = vpop.f32.mrf.mxu0 }
 0x358   :  { %v2308_v18 = vrot.slane %v3982_v26, 4  ;;  %v2322_v19 = vmul.f32 %v3982_v26, %v3982_v26 }
 0x359   :  { %v2301_v20 = vpop.f32.mrf.mxu0 }
 0x35a   :  { %v2309_v22 = vadd.f32 %v2308_v18, %v3982_v26  ;;  %v2324_v23 = vrot.slane %v2322_v19, 4  ;;  %v2314_v24 = vrot.slane %v2301_v20, 4  ;;  %v2323_v25 = vmul.f32 %v2301_v20, %v2301_v20 }
 0x35b   :  { %v2303_v27 = vpop.f32.mrf.mxu0  ;;  %v2423_v18 = vrot.slane %v2414_v14, %v3883_v31 }
 0x35c   :  { %v2310_v0 = vrot.slane %v2309_v22, 2  ;;  %v2325_v29 = vadd.f32 %v2324_v23, %v2322_v19  ;;  %v2315_v32 = vadd.f32 %v2314_v24, %v2301_v20  ;;  %v2330_v33 = vrot.slane %v2323_v25, 4 }
 0x35d   :  { %v2304_v34 = vpop.f32.mrf.mxu0  ;;  %v2426_v27 = vadd.f32 %v2419_v5, %v3930_v54  ;;  %v3667_v54 = vld [vmem:[%s4090_s5 + $0x10] sm:$0xff]  }
 0x35e   :  { %v2311_v36 = vadd.f32 %v2310_v0, %v2309_v22  ;;  %v2326_v37 = vrot.slane %v2325_v29, 2  ;;  %v2316_v38 = vrot.slane %v2315_v32, 2  ;;  %v2331_v39 = vadd.f32 %v2330_v33, %v2323_v25 }
 0x35f   :  { %v2427_v0 = vadd.f32 %v2423_v18, %v3932_v59  ;;  %v3668_v59 = vld [vmem:[%s4090_s5 + $0x8] sm:$0xff]  }
 0x360   :  { %v2312_v40 = vrot.slane %v2311_v36, 1  ;;  %v2327_v41 = vadd.f32 %v2326_v37, %v2325_v29  ;;  %v2317_v42 = vadd.f32 %v2316_v38, %v2315_v32  ;;  %v2332_v43 = vrot.slane %v2331_v39, 2 }
 0x362   :  { %v2313_v44 = vadd.f32 %v2312_v40, %v2311_v36  ;;  %v2328_v46 = vrot.slane %v2327_v41, 1  ;;  %v2318_v48 = vrot.slane %v2317_v42, 1  ;;  %v2333_v49 = vadd.f32 %v2332_v43, %v2331_v39  ;;  %v3197_v39 = vld [vmem:[%s4092_s7 + $0x18] ss:$0 sm:$0xff] }
 0x363   :  { %2871 = vrot.lane.b32.xlu0 %v3197_v39, %s3769_s27 }
 0x364   :  { %v2320_v50 = vmul.f32 0.125, %v2313_v44  ;;  %v2329_v51 = vadd.f32 %v2328_v46, %v2327_v41  ;;  %v2319_v8 = vadd.f32 %v2318_v48, %v2317_v42  ;;  %v2334_v15 = vrot.slane %v2333_v49, 1 }
 0x366   :  { %v2336_v53 = vmul.f32 0.125, %v2329_v51  ;;  %v2338_v35 = vmul.f32 %v2320_v50, %v2320_v50  ;;  %v2321_v45 = vmul.f32 0.125, %v2319_v8  ;;  %v2335_v55 = vadd.f32 %v2334_v15, %v2333_v49 }
 0x368   :  { %v2340_v56 = vsub.f32 %v2336_v53, %v2338_v35  ;;  %v2337_v57 = vmul.f32 0.125, %v2335_v55  ;;  %v2339_v58 = vmul.f32 %v2321_v45, %v2321_v45 }
 0x36a   :  { %v2342_v60 = vmax.f32 %v2340_v56, 0.0  ;;  %v2341_v52 = vsub.f32 %v2337_v57, %v2339_v58 }
 0x36c   :  { %v2344_v61 = vadd.f32 1e-05, %v2342_v60  ;;  %v2343_v62 = vmax.f32 %v2341_v52, 0.0 }
 0x36e   :  { %v2345_v47 = vadd.f32 1e-05, %v2343_v62  ;;  %3684 = vrsqrt.f32 %v2344_v61 }
 0x370   :  { %3686 = vrsqrt.f32 %v2345_v47 }
 0x37b   :  { %v3685_v63 = vpop.eup %3684 }
 0x37d   :  { %v3687_v1 = vpop.eup %3686 }
 0x37e   :  { %v2350_v2 = vcombine.low %v3685_v63, %v3687_v1 }
 0x380   :  { %v2357_v3 = vrot.slane %v2350_v2, %v3873_v21  ;;  %v2602_v2 = vld [vmem:[%s4092_s7 + $0x12] sm:$0x1] }
 0x382   :  { %v2364_v30 = vrot.slane %v2357_v3, %v3873_v21 }
 0x384   :  { %v2366_v6 = vmul.f32 %v2364_v30, %v2306_v4  ;;  %v2603_v30 = vld [vmem:[%s4092_s7 + $0x13] sm:$0x1] }
 0x386   :  { %v2371_v7 = vrot.slane %v2366_v6, %v3880_v28  ;;  %v2375_v9 = vrot.slane %v2366_v6, %v3883_v31 }
 0x388   :  { %v2378_v10 = vmul.f32 %v2371_v7, %v2320_v50  ;;  %v2379_v11 = vmul.f32 %v2375_v9, %v2321_v45  ;;  %v2400_v22 = vmul.f32 %v2375_v9, %v2301_v20  ;;  %v2399_v24 = vmul.f32 %v2371_v7, %v3982_v26  ;;  %v3669_v20 = vld [vmem:[%s4090_s5] sm:$0xff]  }
 0x389   :  { %v3767_v26 = vmov 0.0  }
 0x38a   :  { %v2382_v12 = vcombine.low %v2378_v10, %v2379_v11  ;;  %3230 = vmatprep.subr.bf16.mxu1 %v3767_v26 }
 0x38c   :  { %v2389_v13 = vrot.slane %v2382_v12, %v3873_v21 }
 0x38e   :  { %v2396_v17 = vrot.slane %v2389_v13, %v3873_v21 }
 0x390   :  { %v2398_v19 = vsub.f32 %v2307_v16, %v2396_v17  ;;  %v3670_v16 = vld [vmem:[%s4091_s6 + $0x8] sm:$0xff]   ;;  %v3671_v17 = vld [vmem:[%s4091_s6] sm:$0xff]  }
 0x392   :  { %v2409_v23 = vrot.slane %v2398_v19, %v3883_v31  ;;  %v2405_v25 = vrot.slane %v2398_v19, %v3880_v28  ;;  %v3666_v31 = vld [vmem:[%s4090_s5 + $0x18] sm:$0xff]  }
 0x394   :  { %v2413_v29 = vadd.f32 %v2409_v23, %v2400_v22  ;;  %v2412_v32 = vadd.f32 %v2405_v25, %v2399_v24 }
 0x396   :  { %v2429_v33 = vadd.f32 %v2427_v0, %v2413_v29  ;;  %v2428_v21 = vadd.f32 %v2426_v27, %v2412_v32 }
 0x398   :  { %v2431_v34 = vmax.f32 %v2429_v33, 0.0  ;;  %v2430_v36 = vmax.f32 %v2428_v21, 0.0 }
 0x39a   :  { %v2433_v37 = vpack.c.bf16 %v2431_v34, %v2431_v34  ;;  %v2432_v38 = vpack.c.bf16 %v2430_v36, %v2430_v36 }
 0x39c   :  { %2594 = vmatprep.mubr.bf16.mxu1 %v2433_v37 }
 0x39d   :  { %2595 = vmatmul.mubr.bf16.vlgmr.msra.gmra.mxu1 %v2432_v38 }
 0x39e   :  { %3231 = vmatpush3.bf16.msra.mxu1 %v3666_v31  ;;  %3238 = vmatprep.mubr.msk.bf16.mxu1 %vm3768_vm0, %v3767_v26 }
 0x39f   :  { %3232 = vmatprep.subr.bf16.mxu1 %v3767_v26 }
 0x3a2   :  { %3233 = vmatpush3.bf16.msra.mxu1 %v3667_v54 }
 0x3a3   :  { %3234 = vmatprep.subr.bf16.mxu1 %v3767_v26 }
 0x3a6   :  { %3235 = vmatpush3.bf16.msra.mxu1 %v3668_v59 }
 0x3a7   :  { %3236 = vmatprep.subr.bf16.mxu1 %v3767_v26 }
 0x3aa   :  { %3237 = vmatpush3.bf16.msra.mxu1 %v3669_v20 }
 0x3ab   :  { %3242 = vmatprep.subr.bf16.mxu1 %v3767_v26 }
 0x45d   :  { %v3216_v40 = vpop.f32.mrf.mxu1 }
 0x45f   :  { %v3217_v41 = vpop.f32.mrf.mxu1 }
 0x460   :  { %v3218_v42 = vadd.f32 %v3217_v41, %v3216_v40 }
 0x461   :  { %v3219_v43 = vpop.f32.mrf.mxu1 }
 0x462   :  { %v2605_v44 = vsel %vm2604_vm1, %v3218_v42, 0.0  ;;  %v2613_v46 = vmul.f32 %v3218_v42, %v3218_v42 }
 0x463   :  { %v2606_v48 = vrot.slane %v2605_v44, 4  ;;  %v3220_v49 = vpop.f32.mrf.mxu1 }
 0x464   :  { %v2614_v50 = vsel %vm2604_vm1, %v2613_v46, 0.0  ;;  %v2722_v46 = vld [vmem:[%s4092_s7 + $0x15] sm:$0x1] }
 0x465   :  { %v2607_v51 = vadd.f32 %v2606_v48, %v2605_v44  ;;  %v2615_v8 = vrot.slane %v2614_v50, 4 }
 0x467   :  { %v2608_v15 = vrot.slane %v2607_v51, 2  ;;  %v2616_v53 = vadd.f32 %v2615_v8, %v2614_v50 }
 0x469   :  { %v2609_v35 = vadd.f32 %v2608_v15, %v2607_v51  ;;  %v2617_v45 = vrot.slane %v2616_v53, 2 }
 0x46b   :  { %v2610_v55 = vrot.slane %v2609_v35, 1  ;;  %v2618_v56 = vadd.f32 %v2617_v45, %v2616_v53  ;;  %v3198_v45 = vld [vmem:[%s4092_s7 + $0x19] ss:$0 sm:$0xff] }
 0x46c   :  { %2887 = vrot.lane.b32.xlu1 %v3198_v45, %s3769_s27 }
 0x46d   :  { %v2611_v57 = vadd.f32 %v2610_v55, %v2609_v35  ;;  %v2619_v58 = vrot.slane %v2618_v56, 1 }
 0x46f   :  { %v2612_v60 = vmul.f32 0.125, %v2611_v57  ;;  %v2620_v52 = vadd.f32 %v2619_v58, %v2618_v56 }
 0x471   :  { %v2621_v61 = vmul.f32 0.125, %v2620_v52  ;;  %v2622_v62 = vmul.f32 %v2612_v60, %v2612_v60 }
 0x473   :  { %v2623_v47 = vsub.f32 %v2621_v61, %v2622_v62 }
 0x475   :  { %v2624_v63 = vmax.f32 %v2623_v47, 0.0 }
 0x477   :  { %v2625_v1 = vadd.f32 1e-05, %v2624_v63 }
 0x479   :  { %3688 = vrsqrt.f32 %v2625_v1 }
 0x486   :  { %v3689_v3 = vpop.eup %3688 }
 0x487   :  { %v2627_v4 = vmul.f32 %v3689_v3, %v2602_v2 }
 0x489   :  { %v2628_v6 = vmul.f32 %v2627_v4, %v2612_v60  ;;  %v2634_v7 = vrot.slane %v2627_v4, %v3880_v28 }
 0x48b   :  { %v2629_v9 = vsub.f32 %v2603_v30, %v2628_v6  ;;  %v2636_v10 = vmul.f32 %v3218_v42, %v2634_v7  ;;  %v2721_v42 = vld [vmem:[%s4092_s7 + $0x14] sm:$0x1] }
 0x48d   :  { %v2641_v11 = vrot.slane %v2629_v9, %v3880_v28 }
 0x48f   :  { %v2643_v12 = vadd.f32 %v2641_v11, %v2636_v10 }
 0x491   :  { %v2644_v13 = vmax.f32 %v2643_v12, 0.0 }
 0x493   :  { %v2645_v14 = vpack.c.bf16 %v2644_v13, %v2644_v13 }
 0x495   :  { %3239 = vmatmul.mubr.msk.bf16.vlgmr.msra.gmra.mxu1 %vm2604_vm1, %v2645_v14 }
 0x496   :  { %3246 = vmatprep.mubr.msk.bf16.mxu1 %vm3768_vm0, %v3767_v26  ;;  %3243 = vmatpush3.bf16.msra.mxu1 %v3670_v16 }
 0x497   :  { %3244 = vmatprep.subr.bf16.mxu1 %v3767_v26 }
 0x49a   :  { %3245 = vmatpush3.bf16.msra.mxu1 %v3671_v17 }
 0x555   :  { %v4045_v5 = vpop.f32.mrf.mxu1 }
 0x556   :  { %v2724_v18 = vsel %vm2723_vm2, %v4045_v5, 0.0  ;;  %v2732_v19 = vmul.f32 %v4045_v5, %v4045_v5 }
 0x557   :  { %v2725_v22 = vrot.slane %v2724_v18, 4  ;;  %v3240_v23 = vpop.f32.mrf.mxu1 }
 0x558   :  { %v2733_v24 = vsel %vm2723_vm2, %v2732_v19, 0.0  ;;  %v2825_v23 = vld [vmem:[%s4092_s7 + $0x17] sm:$0x1] }
 0x559   :  { %v2726_v25 = vadd.f32 %v2725_v22, %v2724_v18  ;;  %v2734_v27 = vrot.slane %v2733_v24, 4  ;;  %v2718_v0 = vpop.f32.mrf.mxu1  ;;  %v2824_v18 = vld [vmem:[%s4092_s7 + $0x16] sm:$0x1] }
 0x55b   :  { %v2727_v29 = vrot.slane %v2726_v25, 2  ;;  %v2735_v32 = vadd.f32 %v2734_v27, %v2733_v24  ;;  %v3241_v33 = vpop.f32.mrf.mxu1 }
 0x55c   :  { %v2872_v33 = vpop.permute.xlu0 %2871 }
 0x55d   :  { %v2728_v21 = vadd.f32 %v2727_v29, %v2726_v25  ;;  %v2736_v34 = vrot.slane %v2735_v32, 2 }
 0x55f   :  { %v2729_v36 = vrot.slane %v2728_v21, 1  ;;  %v2737_v37 = vadd.f32 %v2736_v34, %v2735_v32 }
 0x561   :  { %v2730_v38 = vadd.f32 %v2729_v36, %v2728_v21  ;;  %v2738_v31 = vrot.slane %v2737_v37, 1  ;;  %v2874_v21 = vadd.f32 %v2872_v33, %v4045_v5 }
 0x563   :  { %v2731_v26 = vmul.f32 0.125, %v2730_v38  ;;  %v2739_v54 = vadd.f32 %v2738_v31, %v2737_v37  ;;  %v2888_v37 = vpop.permute.xlu1 %2887 }
 0x565   :  { %v2740_v59 = vmul.f32 0.125, %v2739_v54  ;;  %v2741_v20 = vmul.f32 %v2731_v26, %v2731_v26 }
 0x567   :  { %v2742_v39 = vsub.f32 %v2740_v59, %v2741_v20 }
 0x569   :  { %v2743_v40 = vmax.f32 %v2742_v39, 0.0 }
 0x56b   :  { %v2744_v41 = vadd.f32 1e-05, %v2743_v40 }
 0x56d   :  { %3690 = vrsqrt.f32 %v2744_v41 }
 0x57a   :  { %v3691_v43 = vpop.eup %3690 }
 0x57b   :  { %v2746_v44 = vmul.f32 %v3691_v43, %v2721_v42 }
 0x57d   :  { %v2747_v48 = vmul.f32 %v2746_v44, %v2731_v26  ;;  %v2753_v49 = vrot.slane %v2746_v44, %v3880_v28 }
 0x57f   :  { %v2748_v50 = vsub.f32 %v2722_v46, %v2747_v48  ;;  %v2755_v51 = vmul.f32 %v2753_v49, %v4045_v5 }
 0x581   :  { %v2760_v8 = vrot.slane %v2748_v50, %v3880_v28 }
 0x583   :  { %v2762_v15 = vadd.f32 %v2760_v8, %v2755_v51 }
 0x585   :  { %v2763_v53 = vmax.f32 %v2762_v15, 0.0 }
 0x587   :  { %v2764_v35 = vpack.c.bf16 %v2763_v53, %v2763_v53 }
 0x589   :  { %3247 = vmatmul.mubr.msk.bf16.vlgmr.msra.gmra.mxu1 %vm2723_vm2, %v2764_v35 }
 0x649   :  { %v2818_v55 = vpop.f32.mrf.mxu1 }
 0x64a   :  { %v2826_v56 = vsel %vm2723_vm2, %v2818_v55, 0.0  ;;  %v2834_v57 = vmul.f32 %v2818_v55, %v2818_v55 }
 0x64b   :  { %v2827_v58 = vrot.slane %v2826_v56, 4  ;;  %v3248_v60 = vpop.f32.mrf.mxu1 }
 0x64c   :  { %v2835_v52 = vsel %vm2723_vm2, %v2834_v57, 0.0 }
 0x64d   :  { %v2828_v61 = vadd.f32 %v2827_v58, %v2826_v56  ;;  %v2836_v62 = vrot.slane %v2835_v52, 4  ;;  %v2821_v47 = vpop.f32.mrf.mxu1 }
 0x64f   :  { %v2829_v63 = vrot.slane %v2828_v61, 2  ;;  %v2837_v1 = vadd.f32 %v2836_v62, %v2835_v52  ;;  %v3249_v2 = vpop.f32.mrf.mxu1 }
 0x651   :  { %v2830_v3 = vadd.f32 %v2829_v63, %v2828_v61  ;;  %v2838_v4 = vrot.slane %v2837_v1, 2 }
 0x653   :  { %v2831_v30 = vrot.slane %v2830_v3, 1  ;;  %v2839_v6 = vadd.f32 %v2838_v4, %v2837_v1 }
 0x655   :  { %v2832_v7 = vadd.f32 %v2831_v30, %v2830_v3  ;;  %v2840_v9 = vrot.slane %v2839_v6, 1 }
 0x657   :  { %v2833_v10 = vmul.f32 0.125, %v2832_v7  ;;  %v2841_v11 = vadd.f32 %v2840_v9, %v2839_v6 }
 0x659   :  { %v2842_v12 = vmul.f32 0.125, %v2841_v11  ;;  %v2843_v13 = vmul.f32 %v2833_v10, %v2833_v10 }
 0x65b   :  { %v2844_v14 = vsub.f32 %v2842_v12, %v2843_v13 }
 0x65d   :  { %v2845_v16 = vmax.f32 %v2844_v14, 0.0 }
 0x65f   :  { %v2846_v17 = vadd.f32 1e-05, %v2845_v16 }
 0x661   :  { %3692 = vrsqrt.f32 %v2846_v17 }
 0x66e   :  { %v3693_v19 = vpop.eup %3692 }
 0x66f   :  { %v2848_v22 = vmul.f32 %v3693_v19, %v2824_v18 }
 0x671   :  { %v2849_v24 = vmul.f32 %v2848_v22, %v2833_v10  ;;  %v2855_v25 = vrot.slane %v2848_v22, %v3880_v28 }
 0x673   :  { %v2850_v27 = vsub.f32 %v2825_v23, %v2849_v24  ;;  %v2857_v0 = vmul.f32 %v2855_v25, %v2818_v55 }
 0x675   :  { %v2862_v29 = vrot.slane %v2850_v27, %v3880_v28  ;;  %v3199_v28 = vld [vmem:[%s4092_s7 + $0x1a] ss:$0 sm:$0xff] }
 0x677   :  { %v2864_v32 = vadd.f32 %v2862_v29, %v2857_v0 }
 0x679   :  { %2876 = vrot.lane.b32.xlu0 %v2864_v32, %s3769_s27 }
 0x6eb   :  { %v2877_v34 = vpop.permute.xlu0 %2876 }
 0x6ec   :  { %v2879_v36 = vadd.f32 %v2877_v34, %v2874_v21 }
 0x6ee   :  { %v2880_v38 = vmax.f32 %v2879_v36, 0.0 }
 0x6f0   :  { %v2890_v31 = vmul.f32 %v2888_v37, %v2880_v38 }
 0x6f2   :  { %2892 = vrot.lane.b32.xlu1 %v2890_v31, %s3770_s20 }
 0x764   :  { %v2893_v26 = vpop.permute.xlu1 %2892 }
 0x765   :  { %v2895_v54 = vsel %vm2723_vm2, %v2893_v26, 0.0 }
 0x766   :  { %2896 = vadd.xlane.f32.xlu0 %v2895_v54 }
 0x7ef   :  { %v2897_v59 = vpop.xlane.xlu0 %2896 }
 0x7f0   :  { %v2905_v20 = vadd.f32 %v3199_v28, %v2897_v59 }
 0x7f2   :  { %2907 = vst.msk [vmem:[%s4093_s8] sm:$0xff] %vm2906_vm3, %v2905_v20 }
 0x7f3   :  { %2912 = vsyncpa [#allocation3], 1 }
 0x7f4   :  { %2913 = vsyncpa [#allocation5], 1 }

</bundles_post_ra>
